<compile_context>
chip_gen: v7x
topology: tpu7x:2x2x1
jax: 0.10.0
libtpu: 0.0.40
codegen_flags: <defaults>
</compile_context>

<pallas_src>
import jax
import jax.numpy as jnp
from jax.experimental import pallas as pl
from jax.experimental.pallas import tpu as pltpu


# ---------------------------------------------------------------------------
# Pallas kernels
# ---------------------------------------------------------------------------

def _make_up_upconv_kernel(wop, ho):
    """Fused bilinear-2x upsample + Conv2d(2x2,'same') + bias + ReLU.

    Per grid step (one batch element):
      x_ref : (1, Cin, H*W)          channel-major, spatial row-flattened input
      rw_ref: (H*W, H*Wop)           W-direction upsample operator (+ zero pad col)
      rh_ref: (H*Wop, Hop*Wop + 1)   H-direction upsample operator (+ zero pad row/col)
      w_ref : (4, Cout, Cin)         2x2 conv taps, tap index = di*2 + dj
      b_ref : (Cout, 1)              bias (f32)
      o_ref : (1, Cout, Ho*Wop)      output rows of stride Wop (last col junk)
    """
    s = ho * wop

    def kernel(x_ref, rw_ref, rh_ref, w_ref, b_ref, o_ref):
        cdt = x_ref.dtype
        cout = o_ref.shape[1]
        x = x_ref[0]                                                  # (Cin, H*W)
        # Separable bilinear 2x upsample (incl. trailing zero row/col that the
        # 'same' 2x2 conv pads after); result stays in VMEM/registers.
        t = jnp.dot(x, rw_ref[...], preferred_element_type=jnp.float32)
        up = jnp.dot(t.astype(cdt), rh_ref[...],
                     preferred_element_type=jnp.float32)              # (Cin, Hop*Wop+1)
        up = up.astype(cdt)
        w = w_ref[...]                                                # (4, Cout, Cin)
        acc = jnp.zeros((cout, s), jnp.float32)
        for di in range(2):
            for dj in range(2):
                off = di * wop + dj
                acc = acc + jnp.dot(w[di * 2 + dj], up[:, off:off + s],
                                    preferred_element_type=jnp.float32)
        acc = acc + b_ref[...]
        o_ref[0] = jnp.maximum(acc, 0.0).astype(o_ref.dtype)

    return kernel


def _make_conv3x3_kernel(n_inputs, wb, h_out):
    """Conv2d(3x3,'same') + bias + ReLU over `n_inputs` channel groups.

    Passing the up_conv output and the skip tensor as separate channel groups
    (with the weight split row-wise) makes the channel concat unnecessary.

    Per grid step (one batch element):
      x_ref_k: (1, C_k, Hb*Wb + 2)   (1,1)-padded, row-flattened input (+2 tail pad)
      w_ref_k: (9, Cout, C_k)        3x3 conv taps, tap index = di*3 + dj
      b_ref  : (Cout, 1)
      o_ref  : (1, Cout, Ho*Wb)      output rows of stride Wb (last 2 cols junk)
    """
    s = h_out * wb

    def kernel(*refs):
        x_refs = refs[:n_inputs]
        w_refs = refs[n_inputs:2 * n_inputs]
        b_ref = refs[2 * n_inputs]
        o_ref = refs[2 * n_inputs + 1]
        cout = o_ref.shape[1]
        acc = jnp.zeros((cout, s), jnp.float32)
        for x_ref, w_ref in zip(x_refs, w_refs):
            x = x_ref[0]                                              # (C_k, Hb*Wb+2)
            w = w_ref[...]                                            # (9, Cout, C_k)
            for di in range(3):
                for dj in range(3):
                    off = di * wb + dj
                    acc = acc + jnp.dot(w[di * 3 + dj], x[:, off:off + s],
                                        preferred_element_type=jnp.float32)
        acc = acc + b_ref[...]
        o_ref[0] = jnp.maximum(acc, 0.0).astype(o_ref.dtype)

    return kernel


# ---------------------------------------------------------------------------
# Wrappers (XLA-side glue: padding, flattening, parameter layout)
# ---------------------------------------------------------------------------

def _bilinear_matrix(out_size, in_size):
    """1-D bilinear interpolation matrix, PyTorch align_corners=False."""
    scale = in_size / out_size
    i = jnp.arange(out_size, dtype=jnp.float32)
    src = jnp.maximum((i + 0.5) * scale - 0.5, 0.0)   # PyTorch clamps negatives to 0
    i0 = jnp.minimum(jnp.floor(src).astype(jnp.int32), in_size - 1)
    i1 = jnp.minimum(i0 + 1, in_size - 1)
    w1 = src - i0.astype(jnp.float32)
    w0 = 1.0 - w1
    rows = jnp.arange(out_size)
    a = jnp.zeros((out_size, in_size), jnp.float32)
    a = a.at[rows, i0].add(w0)
    a = a.at[rows, i1].add(w1)
    return a


def upsample2x_upconv_relu(x_nchw, w_up, b_up, *, compute_dtype=jnp.bfloat16):
    """Fused nn.Upsample(2x bilinear) -> Conv2d(Cin,Cout,2x2,'same') -> ReLU."""
    N, Cin, H, W = x_nchw.shape
    Ho, Wo = 2 * H, 2 * W
    Hop, Wop = Ho + 1, Wo + 1        # +1 trailing zero row/col ('same' pad of a 2x2 kernel)
    Cout = w_up.shape[1]

    a_h = _bilinear_matrix(Ho, H)                                       # (Ho, H)
    a_w = _bilinear_matrix(Wo, W)                                       # (Wo, W)
    a_hp = jnp.concatenate([a_h, jnp.zeros((1, H), jnp.float32)], 0)    # (Hop, H)
    a_wpt = jnp.concatenate([a_w.T, jnp.zeros((W, 1), jnp.float32)], 1)  # (W, Wop)
    # Separable upsample expressed as two right-multiplications on the
    # row-flattened image (Kronecker-expanded so the kernel stays purely 2D).
    r_w = jnp.kron(jnp.eye(H, dtype=jnp.float32), a_wpt)                # (H*W, H*Wop)
    r_h = jnp.kron(a_hp.T, jnp.eye(Wop, dtype=jnp.float32))             # (H*Wop, Hop*Wop)
    r_h = jnp.pad(r_h, ((0, 0), (0, 1)))                                # keep tap slices in bounds

    x_flat = x_nchw.reshape(N, Cin, H * W).astype(compute_dtype)

    out = pl.pallas_call(
        _make_up_upconv_kernel(Wop, Ho),
        out_shape=jax.ShapeDtypeStruct((N, Cout, Ho * Wop), compute_dtype),
        grid=(N,),
        in_specs=[
            pl.BlockSpec((1, Cin, H * W), lambda n: (n, 0, 0)),
            pl.BlockSpec((H * W, H * Wop), lambda n: (0, 0)),
            pl.BlockSpec((H * Wop, Hop * Wop + 1), lambda n: (0, 0)),
            pl.BlockSpec((4, Cout, Cin), lambda n: (0, 0, 0)),
            pl.BlockSpec((Cout, 1), lambda n: (0, 0)),
        ],
        out_specs=pl.BlockSpec((1, Cout, Ho * Wop), lambda n: (n, 0, 0)),
        compiler_params=pltpu.CompilerParams(dimension_semantics=("parallel",)),
    )(x_flat, r_w.astype(compute_dtype), r_h.astype(compute_dtype),
      w_up.astype(compute_dtype), b_up.reshape(Cout, 1).astype(jnp.float32))
    # Strip the row-stride padding column -> (N, Cout, Ho, Wo), still NCHW.
    return out.reshape(N, Cout, Ho, Wop)[:, :, :, :Wo]


def conv3x3_relu(xs, ws, b, *, compute_dtype=jnp.bfloat16, out_dtype=None):
    """Conv2d(3x3, padding='same') + bias + ReLU on NCHW channel groups.

    `xs` are channel groups treated as if concatenated along dim 1; `ws[k]`
    is the matching (9, Cout, C_k) weight slice (concat never materialized).
    """
    N, _, H, W = xs[0].shape
    Cout = ws[0].shape[1]
    Hb, Wb = H + 2, W + 2
    out_dtype = compute_dtype if out_dtype is None else out_dtype

    def prep(x):
        xp = jnp.pad(x.astype(compute_dtype), ((0, 0), (0, 0), (1, 1), (1, 1)))
        xf = xp.reshape(N, x.shape[1], Hb * Wb)
        return jnp.pad(xf, ((0, 0), (0, 0), (0, 2)))   # tail pad keeps tap slices in bounds

    xfs = [prep(x) for x in xs]
    wds = [w.astype(compute_dtype) for w in ws]

    in_specs = (
        [pl.BlockSpec((1, xf.shape[1], Hb * Wb + 2), lambda n: (n, 0, 0)) for xf in xfs]
        + [pl.BlockSpec(w.shape, lambda n: (0, 0, 0)) for w in wds]
        + [pl.BlockSpec((Cout, 1), lambda n: (0, 0))]
    )
    out = pl.pallas_call(
        _make_conv3x3_kernel(len(xfs), Wb, H),
        out_shape=jax.ShapeDtypeStruct((N, Cout, H * Wb), out_dtype),
        grid=(N,),
        in_specs=in_specs,
        out_specs=pl.BlockSpec((1, Cout, H * Wb), lambda n: (n, 0, 0)),
        compiler_params=pltpu.CompilerParams(dimension_semantics=("parallel",)),
    )(*xfs, *wds, b.reshape(Cout, 1).astype(jnp.float32))
    # Strip the row-stride padding columns -> (N, Cout, H, W), still NCHW.
    return out.reshape(N, Cout, H, Wb)[:, :, :, :W]


def up_block_forward(x_nchw, skip_nchw, params, compute_dtype=jnp.bfloat16):
    """Equivalent of UpBlock.forward(x, skip); NCHW in, NCHW out."""
    # self.up_conv(self.up(x))  -- single fused Pallas kernel
    y = upsample2x_upconv_relu(x_nchw, params["w_up"], params["b_up"],
                               compute_dtype=compute_dtype)
    # self.convs(torch.cat([y, skip], 1)) -- concat folded into split weights
    z = conv3x3_relu([y, skip_nchw], [params["w1_y"], params["w1_s"]], params["b1"],
                     compute_dtype=compute_dtype)
    z = conv3x3_relu([z], [params["w2"]], params["b2"],
                     compute_dtype=compute_dtype, out_dtype=jnp.float32)
    return z


# ---------------------------------------------------------------------------
# Parameters (PyTorch layouts + conversion to the kernel layout)
# ---------------------------------------------------------------------------

def init_torch_params(key, in_channels, out_channels):
    """Deterministic synthetic weights in PyTorch layouts (OIHW / (O,))."""
    ks = jax.random.split(key, 6)

    def conv_w(k, cout, cin, kh, kw):
        return jax.random.normal(k, (cout, cin, kh, kw), jnp.float32) * 0.1

    return {
        "w_up": conv_w(ks[0], out_channels, in_channels, 2, 2),
        "b_up": jax.random.normal(ks[1], (out_channels,), jnp.float32) * 0.1,
        "w1": conv_w(ks[2], out_channels, in_channels, 3, 3),
        "b1": jax.random.normal(ks[3], (out_channels,), jnp.float32) * 0.1,
        "w2": conv_w(ks[4], out_channels, out_channels, 3, 3),
        "b2": jax.random.normal(ks[5], (out_channels,), jnp.float32) * 0.1,
    }


def prepare_params(torch_params, out_channels):
    """OIHW -> (kh*kw, Cout, Cin) tap-major layout; split w1 into the part that
    multiplies the up_conv output and the part that multiplies skip."""
    def taps(w):
        cout, cin, kh, kw = w.shape
        return jnp.transpose(w, (2, 3, 0, 1)).reshape(kh * kw, cout, cin)

    w1 = torch_params["w1"]
    return {
        "w_up": taps(torch_params["w_up"]),
        "b_up": torch_params["b_up"],
        "w1_y": taps(w1[:, :out_channels]),
        "w1_s": taps(w1[:, out_channels:]),
        "b1": torch_params["b1"],
        "w2": taps(torch_params["w2"]),
        "b2": torch_params["b2"],
    }


# ---------------------------------------------------------------------------
# Pure-XLA f32 reference (faithful to the PyTorch module) for validation
# ---------------------------------------------------------------------------

def reference_forward(x, skip, tp):
    N, Cin, H, W = x.shape
    a_h = _bilinear_matrix(2 * H, H)
    a_w = _bilinear_matrix(2 * W, W)
    up = jnp.einsum("oh,nchw,pw->ncop", a_h, x, a_w)

    def conv(v, w, b, pads):
        out = jax.lax.conv_general_dilated(
            v, w, window_strides=(1, 1), padding=pads,
            dimension_numbers=("NCHW", "OIHW", "NCHW"))
        return jax.nn.relu(out + b[None, :, None, None])

    y = conv(up, tp["w_up"], tp["b_up"], [(0, 1), (0, 1)])
    cat = jnp.concatenate([y, skip], axis=1)
    z = conv(cat, tp["w1"], tp["b1"], [(1, 1), (1, 1)])
    return conv(z, tp["w2"], tp["b2"], [(1, 1), (1, 1)])


if __name__ == "__main__":
    in_channels, out_channels = 8, 4
    N, H, W = 2, 8, 8

    key = jax.random.PRNGKey(0)
    kx, ksk, kp = jax.random.split(key, 3)
    x = jax.random.normal(kx, (N, in_channels, H, W), jnp.float32)
    # skip has (in_channels - out_channels) channels so that cat -> in_channels
    skip = jax.random.normal(
        ksk, (N, in_channels - out_channels, 2 * H, 2 * W), jnp.float32)
    torch_params = init_torch_params(kp, in_channels, out_channels)
    params = prepare_params(torch_params, out_channels)

    out = jax.jit(up_block_forward)(x, skip, params)
    jax.block_until_ready(out)
    assert out.shape == (N, out_channels, 2 * H, 2 * W), out.shape
    assert bool(jnp.all(jnp.isfinite(out)))

    # bf16 matmul operands / f32 accumulation -> loose tolerance vs f32 reference
    ref = jax.jit(reference_forward)(x, skip, torch_params)
    err = float(jnp.max(jnp.abs(out - ref)))
    tol = 5e-2 * float(jnp.max(jnp.abs(ref))) + 5e-2
    assert err < tol, (err, tol)

    print("KERNEL_OK")
</pallas_src>

<mosaic_0001>
module attributes {stable_mosaic.version = 11 : i64} {
  func.func private @main(%arg0: i32) attributes {dimension_semantics = [#tpu.dimension_semantics<core_parallel>], iteration_bounds = array<i64: 2>, tpu.core_type = #tpu.core_type<sc_scalar_subcore>, window_params = []} {
    return
  }
}

module attributes {stable_mosaic.version = 11 : i64} {
  func.func private @main(%arg0: i32) attributes {dimension_semantics = [#tpu.dimension_semantics<core_parallel>], iteration_bounds = array<i64: 2>, tpu.core_type = #tpu.core_type<sc_scalar_subcore>, window_params = []} {
    return
  }
}

module attributes {stable_mosaic.version = 11 : i64} {
  func.func @kernel(%arg0: i32, %arg1: memref<1x8x64xbf16, #tpu.memory_space<vmem>>, %arg2: memref<64x136xbf16, #tpu.memory_space<vmem>>, %arg3: memref<136x290xbf16, #tpu.memory_space<vmem>>, %arg4: memref<4x4x8xbf16, #tpu.memory_space<vmem>>, %arg5: memref<4x1xf32, #tpu.memory_space<vmem>>, %arg6: memref<1x4x272xbf16, #tpu.memory_space<vmem>>) attributes {dimension_semantics = [#tpu.dimension_semantics<parallel>], iteration_bounds = array<i64: 2>, scalar_prefetch = 0 : i64, scratch_operands = 0 : i64, tpu.core_type = #tpu.core_type<tc>, window_params = [{transform_indices = @transform_0, window_bounds = array<i64: 1, 8, 64>}, {pipeline_mode = #tpu.pipeline_mode<synchronous>, transform_indices = @transform_1, window_bounds = array<i64: 64, 136>}, {pipeline_mode = #tpu.pipeline_mode<synchronous>, transform_indices = @transform_2, window_bounds = array<i64: 136, 290>}, {pipeline_mode = #tpu.pipeline_mode<synchronous>, transform_indices = @transform_3, window_bounds = array<i64: 4, 4, 8>}, {pipeline_mode = #tpu.pipeline_mode<synchronous>, transform_indices = @transform_4, window_bounds = array<i64: 4, 1>}, {transform_indices = @transform_5, window_bounds = array<i64: 1, 4, 272>}]} {
    %c0 = arith.constant 0 : index
    %c0_0 = arith.constant 0 : index
    %c0_1 = arith.constant 0 : index
    %0 = vector.load %arg1[%c0, %c0_0, %c0_1] : memref<1x8x64xbf16, #tpu.memory_space<vmem>>, vector<1x8x64xbf16>
    %1 = vector.shape_cast %0 : vector<1x8x64xbf16> to vector<8x64xbf16>
    %c0_2 = arith.constant 0 : index
    %c0_3 = arith.constant 0 : index
    %2 = vector.load %arg2[%c0_2, %c0_3] : memref<64x136xbf16, #tpu.memory_space<vmem>>, vector<64x136xbf16>
    %cst = arith.constant dense<0.000000e+00> : vector<8x136xf32>
    %3 = tpu.matmul %1, %2, %cst {dimension_numbers = #tpu.dot_dimension_numbers<[1], [0], [0], [1], [0, 0, 1, 1], [], []>} : vector<8x64xbf16>, vector<64x136xbf16>, vector<8x136xf32> -> vector<8x136xf32>
    %4 = arith.truncf %3 : vector<8x136xf32> to vector<8x136xbf16>
    %c0_4 = arith.constant 0 : index
    %c0_5 = arith.constant 0 : index
    %5 = vector.load %arg3[%c0_4, %c0_5] : memref<136x290xbf16, #tpu.memory_space<vmem>>, vector<136x290xbf16>
    %cst_6 = arith.constant dense<0.000000e+00> : vector<8x290xf32>
    %6 = tpu.matmul %4, %5, %cst_6 {dimension_numbers = #tpu.dot_dimension_numbers<[1], [0], [0], [1], [0, 0, 1, 1], [], []>} : vector<8x136xbf16>, vector<136x290xbf16>, vector<8x290xf32> -> vector<8x290xf32>
    %7 = arith.truncf %6 : vector<8x290xf32> to vector<8x290xbf16>
    %c0_7 = arith.constant 0 : index
    %c0_8 = arith.constant 0 : index
    %c0_9 = arith.constant 0 : index
    %8 = vector.load %arg4[%c0_7, %c0_8, %c0_9] : memref<4x4x8xbf16, #tpu.memory_space<vmem>>, vector<4x4x8xbf16>
    %cst_10 = arith.constant 0.000000e+00 : f32
    %9 = vector.broadcast %cst_10 : f32 to vector<4x272xf32>
    %10 = vector.extract_strided_slice %8 {offsets = [0, 0, 0], sizes = [1, 4, 8], strides = [1, 1, 1]} : vector<4x4x8xbf16> to vector<1x4x8xbf16>
    %11 = vector.shape_cast %10 : vector<1x4x8xbf16> to vector<4x8xbf16>
    %12 = vector.extract_strided_slice %7 {offsets = [0, 0], sizes = [8, 272], strides = [1, 1]} : vector<8x290xbf16> to vector<8x272xbf16>
    %cst_11 = arith.constant dense<0.000000e+00> : vector<4x272xf32>
    %13 = tpu.matmul %11, %12, %cst_11 {dimension_numbers = #tpu.dot_dimension_numbers<[1], [0], [0], [1], [0, 0, 1, 1], [], []>} : vector<4x8xbf16>, vector<8x272xbf16>, vector<4x272xf32> -> vector<4x272xf32>
    %14 = arith.addf %9, %13 : vector<4x272xf32>
    %15 = vector.extract_strided_slice %8 {offsets = [1, 0, 0], sizes = [1, 4, 8], strides = [1, 1, 1]} : vector<4x4x8xbf16> to vector<1x4x8xbf16>
    %16 = vector.shape_cast %15 : vector<1x4x8xbf16> to vector<4x8xbf16>
    %17 = vector.extract_strided_slice %7 {offsets = [0, 1], sizes = [8, 272], strides = [1, 1]} : vector<8x290xbf16> to vector<8x272xbf16>
    %cst_12 = arith.constant dense<0.000000e+00> : vector<4x272xf32>
    %18 = tpu.matmul %16, %17, %cst_12 {dimension_numbers = #tpu.dot_dimension_numbers<[1], [0], [0], [1], [0, 0, 1, 1], [], []>} : vector<4x8xbf16>, vector<8x272xbf16>, vector<4x272xf32> -> vector<4x272xf32>
    %19 = arith.addf %14, %18 : vector<4x272xf32>
    %20 = vector.extract_strided_slice %8 {offsets = [2, 0, 0], sizes = [1, 4, 8], strides = [1, 1, 1]} : vector<4x4x8xbf16> to vector<1x4x8xbf16>
    %21 = vector.shape_cast %20 : vector<1x4x8xbf16> to vector<4x8xbf16>
    %22 = vector.extract_strided_slice %7 {offsets = [0, 17], sizes = [8, 272], strides = [1, 1]} : vector<8x290xbf16> to vector<8x272xbf16>
    %cst_13 = arith.constant dense<0.000000e+00> : vector<4x272xf32>
    %23 = tpu.matmul %21, %22, %cst_13 {dimension_numbers = #tpu.dot_dimension_numbers<[1], [0], [0], [1], [0, 0, 1, 1], [], []>} : vector<4x8xbf16>, vector<8x272xbf16>, vector<4x272xf32> -> vector<4x272xf32>
    %24 = arith.addf %19, %23 : vector<4x272xf32>
    %25 = vector.extract_strided_slice %8 {offsets = [3, 0, 0], sizes = [1, 4, 8], strides = [1, 1, 1]} : vector<4x4x8xbf16> to vector<1x4x8xbf16>
    %26 = vector.shape_cast %25 : vector<1x4x8xbf16> to vector<4x8xbf16>
    %27 = vector.extract_strided_slice %7 {offsets = [0, 18], sizes = [8, 272], strides = [1, 1]} : vector<8x290xbf16> to vector<8x272xbf16>
    %cst_14 = arith.constant dense<0.000000e+00> : vector<4x272xf32>
    %28 = tpu.matmul %26, %27, %cst_14 {dimension_numbers = #tpu.dot_dimension_numbers<[1], [0], [0], [1], [0, 0, 1, 1], [], []>} : vector<4x8xbf16>, vector<8x272xbf16>, vector<4x272xf32> -> vector<4x272xf32>
    %29 = arith.addf %24, %28 : vector<4x272xf32>
    %c0_15 = arith.constant 0 : index
    %c0_16 = arith.constant 0 : index
    %30 = vector.load %arg5[%c0_15, %c0_16] : memref<4x1xf32, #tpu.memory_space<vmem>>, vector<4x1xf32>
    %31 = vector.broadcast %30 : vector<4x1xf32> to vector<4x272xf32>
    %32 = arith.addf %29, %31 : vector<4x272xf32>
    %cst_17 = arith.constant 0.000000e+00 : f32
    %33 = vector.broadcast %cst_17 : f32 to vector<4x272xf32>
    %34 = arith.maximumf %32, %33 : vector<4x272xf32>
    %35 = arith.truncf %34 : vector<4x272xf32> to vector<4x272xbf16>
    %c0_18 = arith.constant 0 : index
    %c0_19 = arith.constant 0 : index
    %c0_20 = arith.constant 0 : index
    %36 = vector.load %arg6[%c0_18, %c0_19, %c0_20] : memref<1x4x272xbf16, #tpu.memory_space<vmem>>, vector<1x4x272xbf16>
    %37 = vector.shape_cast %36 : vector<1x4x272xbf16> to vector<4x272xbf16>
    %38 = vector.shape_cast %35 : vector<4x272xbf16> to vector<1x4x272xbf16>
    tpu.vector_store %arg6[%c0_18, %c0_19, %c0_20], %38 {strides = array<i32>} : memref<1x4x272xbf16, #tpu.memory_space<vmem>>, vector<1x4x272xbf16>,
    return
  }
  func.func @transform_0(%arg0: i32) -> (i32, i32, i32) {
    %c0_i32 = arith.constant 0 : i32
    %c0_i32_0 = arith.constant 0 : i32
    %c0_i32_1 = arith.constant 0 : i32
    return %arg0, %c0_i32, %c0_i32_0 : i32, i32, i32
  }
  func.func @transform_1(%arg0: i32) -> (i32, i32) {
    %c0_i32 = arith.constant 0 : i32
    %c0_i32_0 = arith.constant 0 : i32
    %c0_i32_1 = arith.constant 0 : i32
    return %c0_i32, %c0_i32_0 : i32, i32
  }
  func.func @transform_2(%arg0: i32) -> (i32, i32) {
    %c0_i32 = arith.constant 0 : i32
    %c0_i32_0 = arith.constant 0 : i32
    %c0_i32_1 = arith.constant 0 : i32
    return %c0_i32, %c0_i32_0 : i32, i32
  }
  func.func @transform_3(%arg0: i32) -> (i32, i32, i32) {
    %c0_i32 = arith.constant 0 : i32
    %c0_i32_0 = arith.constant 0 : i32
    %c0_i32_1 = arith.constant 0 : i32
    %c0_i32_2 = arith.constant 0 : i32
    return %c0_i32, %c0_i32_0, %c0_i32_1 : i32, i32, i32
  }
  func.func @transform_4(%arg0: i32) -> (i32, i32) {
    %c0_i32 = arith.constant 0 : i32
    %c0_i32_0 = arith.constant 0 : i32
    %c0_i32_1 = arith.constant 0 : i32
    return %c0_i32, %c0_i32_0 : i32, i32
  }
  func.func @transform_5(%arg0: i32) -> (i32, i32, i32) {
    %c0_i32 = arith.constant 0 : i32
    %c0_i32_0 = arith.constant 0 : i32
    %c0_i32_1 = arith.constant 0 : i32
    return %arg0, %c0_i32, %c0_i32_0 : i32, i32, i32
  }
}

module attributes {stable_mosaic.version = 11 : i64} {
  func.func @kernel(%arg0: i32, %arg1: memref<1x4x326xbf16, #tpu.memory_space<vmem>>, %arg2: memref<1x4x326xbf16, #tpu.memory_space<vmem>>, %arg3: memref<9x4x4xbf16, #tpu.memory_space<vmem>>, %arg4: memref<9x4x4xbf16, #tpu.memory_space<vmem>>, %arg5: memref<4x1xf32, #tpu.memory_space<vmem>>, %arg6: memref<1x4x288xbf16, #tpu.memory_space<vmem>>) attributes {dimension_semantics = [#tpu.dimension_semantics<parallel>], iteration_bounds = array<i64: 2>, scalar_prefetch = 0 : i64, scratch_operands = 0 : i64, tpu.core_type = #tpu.core_type<tc>, window_params = [{transform_indices = @transform_0, window_bounds = array<i64: 1, 4, 326>}, {transform_indices = @transform_1, window_bounds = array<i64: 1, 4, 326>}, {pipeline_mode = #tpu.pipeline_mode<synchronous>, transform_indices = @transform_2, window_bounds = array<i64: 9, 4, 4>}, {pipeline_mode = #tpu.pipeline_mode<synchronous>, transform_indices = @transform_3, window_bounds = array<i64: 9, 4, 4>}, {pipeline_mode = #tpu.pipeline_mode<synchronous>, transform_indices = @transform_4, window_bounds = array<i64: 4, 1>}, {transform_indices = @transform_5, window_bounds = array<i64: 1, 4, 288>}]} {
    %cst = arith.constant 0.000000e+00 : f32
    %0 = vector.broadcast %cst : f32 to vector<4x288xf32>
    %c0 = arith.constant 0 : index
    %c0_0 = arith.constant 0 : index
    %c0_1 = arith.constant 0 : index
    %1 = vector.load %arg1[%c0, %c0_0, %c0_1] : memref<1x4x326xbf16, #tpu.memory_space<vmem>>, vector<1x4x326xbf16>
    %2 = vector.shape_cast %1 : vector<1x4x326xbf16> to vector<4x326xbf16>
    %c0_2 = arith.constant 0 : index
    %c0_3 = arith.constant 0 : index
    %c0_4 = arith.constant 0 : index
    %3 = vector.load %arg3[%c0_2, %c0_3, %c0_4] : memref<9x4x4xbf16, #tpu.memory_space<vmem>>, vector<9x4x4xbf16>
    %4 = vector.extract_strided_slice %3 {offsets = [0, 0, 0], sizes = [1, 4, 4], strides = [1, 1, 1]} : vector<9x4x4xbf16> to vector<1x4x4xbf16>
    %5 = vector.shape_cast %4 : vector<1x4x4xbf16> to vector<4x4xbf16>
    %6 = vector.extract_strided_slice %2 {offsets = [0, 0], sizes = [4, 288], strides = [1, 1]} : vector<4x326xbf16> to vector<4x288xbf16>
    %cst_5 = arith.constant dense<0.000000e+00> : vector<4x288xf32>
    %7 = tpu.matmul %5, %6, %cst_5 {dimension_numbers = #tpu.dot_dimension_numbers<[1], [0], [0], [1], [0, 0, 1, 1], [], []>} : vector<4x4xbf16>, vector<4x288xbf16>, vector<4x288xf32> -> vector<4x288xf32>
    %8 = arith.addf %0, %7 : vector<4x288xf32>
    %9 = vector.extract_strided_slice %3 {offsets = [1, 0, 0], sizes = [1, 4, 4], strides = [1, 1, 1]} : vector<9x4x4xbf16> to vector<1x4x4xbf16>
    %10 = vector.shape_cast %9 : vector<1x4x4xbf16> to vector<4x4xbf16>
    %11 = vector.extract_strided_slice %2 {offsets = [0, 1], sizes = [4, 288], strides = [1, 1]} : vector<4x326xbf16> to vector<4x288xbf16>
    %cst_6 = arith.constant dense<0.000000e+00> : vector<4x288xf32>
    %12 = tpu.matmul %10, %11, %cst_6 {dimension_numbers = #tpu.dot_dimension_numbers<[1], [0], [0], [1], [0, 0, 1, 1], [], []>} : vector<4x4xbf16>, vector<4x288xbf16>, vector<4x288xf32> -> vector<4x288xf32>
    %13 = arith.addf %8, %12 : vector<4x288xf32>
    %14 = vector.extract_strided_slice %3 {offsets = [2, 0, 0], sizes = [1, 4, 4], strides = [1, 1, 1]} : vector<9x4x4xbf16> to vector<1x4x4xbf16>
    %15 = vector.shape_cast %14 : vector<1x4x4xbf16> to vector<4x4xbf16>
    %16 = vector.extract_strided_slice %2 {offsets = [0, 2], sizes = [4, 288], strides = [1, 1]} : vector<4x326xbf16> to vector<4x288xbf16>
    %cst_7 = arith.constant dense<0.000000e+00> : vector<4x288xf32>
    %17 = tpu.matmul %15, %16, %cst_7 {dimension_numbers = #tpu.dot_dimension_numbers<[1], [0], [0], [1], [0, 0, 1, 1], [], []>} : vector<4x4xbf16>, vector<4x288xbf16>, vector<4x288xf32> -> vector<4x288xf32>
    %18 = arith.addf %13, %17 : vector<4x288xf32>
    %19 = vector.extract_strided_slice %3 {offsets = [3, 0, 0], sizes = [1, 4, 4], strides = [1, 1, 1]} : vector<9x4x4xbf16> to vector<1x4x4xbf16>
    %20 = vector.shape_cast %19 : vector<1x4x4xbf16> to vector<4x4xbf16>
    %21 = vector.extract_strided_slice %2 {offsets = [0, 18], sizes = [4, 288], strides = [1, 1]} : vector<4x326xbf16> to vector<4x288xbf16>
    %cst_8 = arith.constant dense<0.000000e+00> : vector<4x288xf32>
    %22 = tpu.matmul %20, %21, %cst_8 {dimension_numbers = #tpu.dot_dimension_numbers<[1], [0], [0], [1], [0, 0, 1, 1], [], []>} : vector<4x4xbf16>, vector<4x288xbf16>, vector<4x288xf32> -> vector<4x288xf32>
    %23 = arith.addf %18, %22 : vector<4x288xf32>
    %24 = vector.extract_strided_slice %3 {offsets = [4, 0, 0], sizes = [1, 4, 4], strides = [1, 1, 1]} : vector<9x4x4xbf16> to vector<1x4x4xbf16>
    %25 = vector.shape_cast %24 : vector<1x4x4xbf16> to vector<4x4xbf16>
    %26 = vector.extract_strided_slice %2 {offsets = [0, 19], sizes = [4, 288], strides = [1, 1]} : vector<4x326xbf16> to vector<4x288xbf16>
    %cst_9 = arith.constant dense<0.000000e+00> : vector<4x288xf32>
    %27 = tpu.matmul %25, %26, %cst_9 {dimension_numbers = #tpu.dot_dimension_numbers<[1], [0], [0], [1], [0, 0, 1, 1], [], []>} : vector<4x4xbf16>, vector<4x288xbf16>, vector<4x288xf32> -> vector<4x288xf32>
    %28 = arith.addf %23, %27 : vector<4x288xf32>
    %29 = vector.extract_strided_slice %3 {offsets = [5, 0, 0], sizes = [1, 4, 4], strides = [1, 1, 1]} : vector<9x4x4xbf16> to vector<1x4x4xbf16>
    %30 = vector.shape_cast %29 : vector<1x4x4xbf16> to vector<4x4xbf16>
    %31 = vector.extract_strided_slice %2 {offsets = [0, 20], sizes = [4, 288], strides = [1, 1]} : vector<4x326xbf16> to vector<4x288xbf16>
    %cst_10 = arith.constant dense<0.000000e+00> : vector<4x288xf32>
    %32 = tpu.matmul %30, %31, %cst_10 {dimension_numbers = #tpu.dot_dimension_numbers<[1], [0], [0], [1], [0, 0, 1, 1], [], []>} : vector<4x4xbf16>, vector<4x288xbf16>, vector<4x288xf32> -> vector<4x288xf32>
    %33 = arith.addf %28, %32 : vector<4x288xf32>
    %34 = vector.extract_strided_slice %3 {offsets = [6, 0, 0], sizes = [1, 4, 4], strides = [1, 1, 1]} : vector<9x4x4xbf16> to vector<1x4x4xbf16>
    %35 = vector.shape_cast %34 : vector<1x4x4xbf16> to vector<4x4xbf16>
    %36 = vector.extract_strided_slice %2 {offsets = [0, 36], sizes = [4, 288], strides = [1, 1]} : vector<4x326xbf16> to vector<4x288xbf16>
    %cst_11 = arith.constant dense<0.000000e+00> : vector<4x288xf32>
    %37 = tpu.matmul %35, %36, %cst_11 {dimension_numbers = #tpu.dot_dimension_numbers<[1], [0], [0], [1], [0, 0, 1, 1], [], []>} : vector<4x4xbf16>, vector<4x288xbf16>, vector<4x288xf32> -> vector<4x288xf32>
    %38 = arith.addf %33, %37 : vector<4x288xf32>
    %39 = vector.extract_strided_slice %3 {offsets = [7, 0, 0], sizes = [1, 4, 4], strides = [1, 1, 1]} : vector<9x4x4xbf16> to vector<1x4x4xbf16>
    %40 = vector.shape_cast %39 : vector<1x4x4xbf16> to vector<4x4xbf16>
    %41 = vector.extract_strided_slice %2 {offsets = [0, 37], sizes = [4, 288], strides = [1, 1]} : vector<4x326xbf16> to vector<4x288xbf16>
    %cst_12 = arith.constant dense<0.000000e+00> : vector<4x288xf32>
    %42 = tpu.matmul %40, %41, %cst_12 {dimension_numbers = #tpu.dot_dimension_numbers<[1], [0], [0], [1], [0, 0, 1, 1], [], []>} : vector<4x4xbf16>, vector<4x288xbf16>, vector<4x288xf32> -> vector<4x288xf32>
    %43 = arith.addf %38, %42 : vector<4x288xf32>
    %44 = vector.extract_strided_slice %3 {offsets = [8, 0, 0], sizes = [1, 4, 4], strides = [1, 1, 1]} : vector<9x4x4xbf16> to vector<1x4x4xbf16>
    %45 = vector.shape_cast %44 : vector<1x4x4xbf16> to vector<4x4xbf16>
    %46 = vector.extract_strided_slice %2 {offsets = [0, 38], sizes = [4, 288], strides = [1, 1]} : vector<4x326xbf16> to vector<4x288xbf16>
    %cst_13 = arith.constant dense<0.000000e+00> : vector<4x288xf32>
    %47 = tpu.matmul %45, %46, %cst_13 {dimension_numbers = #tpu.dot_dimension_numbers<[1], [0], [0], [1], [0, 0, 1, 1], [], []>} : vector<4x4xbf16>, vector<4x288xbf16>, vector<4x288xf32> -> vector<4x288xf32>
    %48 = arith.addf %43, %47 : vector<4x288xf32>
    %c0_14 = arith.constant 0 : index
    %c0_15 = arith.constant 0 : index
    %c0_16 = arith.constant 0 : index
    %49 = vector.load %arg2[%c0_14, %c0_15, %c0_16] : memref<1x4x326xbf16, #tpu.memory_space<vmem>>, vector<1x4x326xbf16>
    %50 = vector.shape_cast %49 : vector<1x4x326xbf16> to vector<4x326xbf16>
    %c0_17 = arith.constant 0 : index
    %c0_18 = arith.constant 0 : index
    %c0_19 = arith.constant 0 : index
    %51 = vector.load %arg4[%c0_17, %c0_18, %c0_19] : memref<9x4x4xbf16, #tpu.memory_space<vmem>>, vector<9x4x4xbf16>
    %52 = vector.extract_strided_slice %51 {offsets = [0, 0, 0], sizes = [1, 4, 4], strides = [1, 1, 1]} : vector<9x4x4xbf16> to vector<1x4x4xbf16>
    %53 = vector.shape_cast %52 : vector<1x4x4xbf16> to vector<4x4xbf16>
    %54 = vector.extract_strided_slice %50 {offsets = [0, 0], sizes = [4, 288], strides = [1, 1]} : vector<4x326xbf16> to vector<4x288xbf16>
    %cst_20 = arith.constant dense<0.000000e+00> : vector<4x288xf32>
    %55 = tpu.matmul %53, %54, %cst_20 {dimension_numbers = #tpu.dot_dimension_numbers<[1], [0], [0], [1], [0, 0, 1, 1], [], []>} : vector<4x4xbf16>, vector<4x288xbf16>, vector<4x288xf32> -> vector<4x288xf32>
    %56 = arith.addf %48, %55 : vector<4x288xf32>
    %57 = vector.extract_strided_slice %51 {offsets = [1, 0, 0], sizes = [1, 4, 4], strides = [1, 1, 1]} : vector<9x4x4xbf16> to vector<1x4x4xbf16>
    %58 = vector.shape_cast %57 : vector<1x4x4xbf16> to vector<4x4xbf16>
    %59 = vector.extract_strided_slice %50 {offsets = [0, 1], sizes = [4, 288], strides = [1, 1]} : vector<4x326xbf16> to vector<4x288xbf16>
    %cst_21 = arith.constant dense<0.000000e+00> : vector<4x288xf32>
    %60 = tpu.matmul %58, %59, %cst_21 {dimension_numbers = #tpu.dot_dimension_numbers<[1], [0], [0], [1], [0, 0, 1, 1], [], []>} : vector<4x4xbf16>, vector<4x288xbf16>, vector<4x288xf32> -> vector<4x288xf32>
    %61 = arith.addf %56, %60 : vector<4x288xf32>
    %62 = vector.extract_strided_slice %51 {offsets = [2, 0, 0], sizes = [1, 4, 4], strides = [1, 1, 1]} : vector<9x4x4xbf16> to vector<1x4x4xbf16>
    %63 = vector.shape_cast %62 : vector<1x4x4xbf16> to vector<4x4xbf16>
    %64 = vector.extract_strided_slice %50 {offsets = [0, 2], sizes = [4, 288], strides = [1, 1]} : vector<4x326xbf16> to vector<4x288xbf16>
    %cst_22 = arith.constant dense<0.000000e+00> : vector<4x288xf32>
    %65 = tpu.matmul %63, %64, %cst_22 {dimension_numbers = #tpu.dot_dimension_numbers<[1], [0], [0], [1], [0, 0, 1, 1], [], []>} : vector<4x4xbf16>, vector<4x288xbf16>, vector<4x288xf32> -> vector<4x288xf32>
    %66 = arith.addf %61, %65 : vector<4x288xf32>
    %67 = vector.extract_strided_slice %51 {offsets = [3, 0, 0], sizes = [1, 4, 4], strides = [1, 1, 1]} : vector<9x4x4xbf16> to vector<1x4x4xbf16>
    %68 = vector.shape_cast %67 : vector<1x4x4xbf16> to vector<4x4xbf16>
    %69 = vector.extract_strided_slice %50 {offsets = [0, 18], sizes = [4, 288], strides = [1, 1]} : vector<4x326xbf16> to vector<4x288xbf16>
    %cst_23 = arith.constant dense<0.000000e+00> : vector<4x288xf32>
    %70 = tpu.matmul %68, %69, %cst_23 {dimension_numbers = #tpu.dot_dimension_numbers<[1], [0], [0], [1], [0, 0, 1, 1], [], []>} : vector<4x4xbf16>, vector<4x288xbf16>, vector<4x288xf32> -> vector<4x288xf32>
    %71 = arith.addf %66, %70 : vector<4x288xf32>
    %72 = vector.extract_strided_slice %51 {offsets = [4, 0, 0], sizes = [1, 4, 4], strides = [1, 1, 1]} : vector<9x4x4xbf16> to vector<1x4x4xbf16>
    %73 = vector.shape_cast %72 : vector<1x4x4xbf16> to vector<4x4xbf16>
    %74 = vector.extract_strided_slice %50 {offsets = [0, 19], sizes = [4, 288], strides = [1, 1]} : vector<4x326xbf16> to vector<4x288xbf16>
    %cst_24 = arith.constant dense<0.000000e+00> : vector<4x288xf32>
    %75 = tpu.matmul %73, %74, %cst_24 {dimension_numbers = #tpu.dot_dimension_numbers<[1], [0], [0], [1], [0, 0, 1, 1], [], []>} : vector<4x4xbf16>, vector<4x288xbf16>, vector<4x288xf32> -> vector<4x288xf32>
    %76 = arith.addf %71, %75 : vector<4x288xf32>
    %77 = vector.extract_strided_slice %51 {offsets = [5, 0, 0], sizes = [1, 4, 4], strides = [1, 1, 1]} : vector<9x4x4xbf16> to vector<1x4x4xbf16>
    %78 = vector.shape_cast %77 : vector<1x4x4xbf16> to vector<4x4xbf16>
    %79 = vector.extract_strided_slice %50 {offsets = [0, 20], sizes = [4, 288], strides = [1, 1]} : vector<4x326xbf16> to vector<4x288xbf16>
    %cst_25 = arith.constant dense<0.000000e+00> : vector<4x288xf32>
    %80 = tpu.matmul %78, %79, %cst_25 {dimension_numbers = #tpu.dot_dimension_numbers<[1], [0], [0], [1], [0, 0, 1, 1], [], []>} : vector<4x4xbf16>, vector<4x288xbf16>, vector<4x288xf32> -> vector<4x288xf32>
    %81 = arith.addf %76, %80 : vector<4x288xf32>
    %82 = vector.extract_strided_slice %51 {offsets = [6, 0, 0], sizes = [1, 4, 4], strides = [1, 1, 1]} : vector<9x4x4xbf16> to vector<1x4x4xbf16>
    %83 = vector.shape_cast %82 : vector<1x4x4xbf16> to vector<4x4xbf16>
    %84 = vector.extract_strided_slice %50 {offsets = [0, 36], sizes = [4, 288], strides = [1, 1]} : vector<4x326xbf16> to vector<4x288xbf16>
    %cst_26 = arith.constant dense<0.000000e+00> : vector<4x288xf32>
    %85 = tpu.matmul %83, %84, %cst_26 {dimension_numbers = #tpu.dot_dimension_numbers<[1], [0], [0], [1], [0, 0, 1, 1], [], []>} : vector<4x4xbf16>, vector<4x288xbf16>, vector<4x288xf32> -> vector<4x288xf32>
    %86 = arith.addf %81, %85 : vector<4x288xf32>
    %87 = vector.extract_strided_slice %51 {offsets = [7, 0, 0], sizes = [1, 4, 4], strides = [1, 1, 1]} : vector<9x4x4xbf16> to vector<1x4x4xbf16>
    %88 = vector.shape_cast %87 : vector<1x4x4xbf16> to vector<4x4xbf16>
    %89 = vector.extract_strided_slice %50 {offsets = [0, 37], sizes = [4, 288], strides = [1, 1]} : vector<4x326xbf16> to vector<4x288xbf16>
    %cst_27 = arith.constant dense<0.000000e+00> : vector<4x288xf32>
    %90 = tpu.matmul %88, %89, %cst_27 {dimension_numbers = #tpu.dot_dimension_numbers<[1], [0], [0], [1], [0, 0, 1, 1], [], []>} : vector<4x4xbf16>, vector<4x288xbf16>, vector<4x288xf32> -> vector<4x288xf32>
    %91 = arith.addf %86, %90 : vector<4x288xf32>
    %92 = vector.extract_strided_slice %51 {offsets = [8, 0, 0], sizes = [1, 4, 4], strides = [1, 1, 1]} : vector<9x4x4xbf16> to vector<1x4x4xbf16>
    %93 = vector.shape_cast %92 : vector<1x4x4xbf16> to vector<4x4xbf16>
    %94 = vector.extract_strided_slice %50 {offsets = [0, 38], sizes = [4, 288], strides = [1, 1]} : vector<4x326xbf16> to vector<4x288xbf16>
    %cst_28 = arith.constant dense<0.000000e+00> : vector<4x288xf32>
    %95 = tpu.matmul %93, %94, %cst_28 {dimension_numbers = #tpu.dot_dimension_numbers<[1], [0], [0], [1], [0, 0, 1, 1], [], []>} : vector<4x4xbf16>, vector<4x288xbf16>, vector<4x288xf32> -> vector<4x288xf32>
    %96 = arith.addf %91, %95 : vector<4x288xf32>
    %c0_29 = arith.constant 0 : index
    %c0_30 = arith.constant 0 : index
    %97 = vector.load %arg5[%c0_29, %c0_30] : memref<4x1xf32, #tpu.memory_space<vmem>>, vector<4x1xf32>
    %98 = vector.broadcast %97 : vector<4x1xf32> to vector<4x288xf32>
    %99 = arith.addf %96, %98 : vector<4x288xf32>
    %cst_31 = arith.constant 0.000000e+00 : f32
    %100 = vector.broadcast %cst_31 : f32 to vector<4x288xf32>
    %101 = arith.maximumf %99, %100 : vector<4x288xf32>
    %102 = arith.truncf %101 : vector<4x288xf32> to vector<4x288xbf16>
    %c0_32 = arith.constant 0 : index
    %c0_33 = arith.constant 0 : index
    %c0_34 = arith.constant 0 : index
    %103 = vector.load %arg6[%c0_32, %c0_33, %c0_34] : memref<1x4x288xbf16, #tpu.memory_space<vmem>>, vector<1x4x288xbf16>
    %104 = vector.shape_cast %103 : vector<1x4x288xbf16> to vector<4x288xbf16>
    %105 = vector.shape_cast %102 : vector<4x288xbf16> to vector<1x4x288xbf16>
    tpu.vector_store %arg6[%c0_32, %c0_33, %c0_34], %105 {strides = array<i32>} : memref<1x4x288xbf16, #tpu.memory_space<vmem>>, vector<1x4x288xbf16>,
    return
  }
  func.func @transform_0(%arg0: i32) -> (i32, i32, i32) {
    %c0_i32 = arith.constant 0 : i32
    %c0_i32_0 = arith.constant 0 : i32
    %c0_i32_1 = arith.constant 0 : i32
    return %arg0, %c0_i32, %c0_i32_0 : i32, i32, i32
  }
  func.func @transform_1(%arg0: i32) -> (i32, i32, i32) {
    %c0_i32 = arith.constant 0 : i32
    %c0_i32_0 = arith.constant 0 : i32
    %c0_i32_1 = arith.constant 0 : i32
    return %arg0, %c0_i32, %c0_i32_0 : i32, i32, i32
  }
  func.func @transform_2(%arg0: i32) -> (i32, i32, i32) {
    %c0_i32 = arith.constant 0 : i32
    %c0_i32_0 = arith.constant 0 : i32
    %c0_i32_1 = arith.constant 0 : i32
    %c0_i32_2 = arith.constant 0 : i32
    return %c0_i32, %c0_i32_0, %c0_i32_1 : i32, i32, i32
  }
  func.func @transform_3(%arg0: i32) -> (i32, i32, i32) {
    %c0_i32 = arith.constant 0 : i32
    %c0_i32_0 = arith.constant 0 : i32
    %c0_i32_1 = arith.constant 0 : i32
    %c0_i32_2 = arith.constant 0 : i32
    return %c0_i32, %c0_i32_0, %c0_i32_1 : i32, i32, i32
  }
  func.func @transform_4(%arg0: i32) -> (i32, i32) {
    %c0_i32 = arith.constant 0 : i32
    %c0_i32_0 = arith.constant 0 : i32
    %c0_i32_1 = arith.constant 0 : i32
    return %c0_i32, %c0_i32_0 : i32, i32
  }
  func.func @transform_5(%arg0: i32) -> (i32, i32, i32) {
    %c0_i32 = arith.constant 0 : i32
    %c0_i32_0 = arith.constant 0 : i32
    %c0_i32_1 = arith.constant 0 : i32
    return %arg0, %c0_i32, %c0_i32_0 : i32, i32, i32
  }
}

module attributes {stable_mosaic.version = 11 : i64} {
  func.func @kernel(%arg0: i32, %arg1: memref<1x4x326xbf16, #tpu.memory_space<vmem>>, %arg2: memref<9x4x4xbf16, #tpu.memory_space<vmem>>, %arg3: memref<4x1xf32, #tpu.memory_space<vmem>>, %arg4: memref<1x4x288xf32, #tpu.memory_space<vmem>>) attributes {dimension_semantics = [#tpu.dimension_semantics<parallel>], iteration_bounds = array<i64: 2>, scalar_prefetch = 0 : i64, scratch_operands = 0 : i64, tpu.core_type = #tpu.core_type<tc>, window_params = [{transform_indices = @transform_0, window_bounds = array<i64: 1, 4, 326>}, {pipeline_mode = #tpu.pipeline_mode<synchronous>, transform_indices = @transform_1, window_bounds = array<i64: 9, 4, 4>}, {pipeline_mode = #tpu.pipeline_mode<synchronous>, transform_indices = @transform_2, window_bounds = array<i64: 4, 1>}, {transform_indices = @transform_3, window_bounds = array<i64: 1, 4, 288>}]} {
    %cst = arith.constant 0.000000e+00 : f32
    %0 = vector.broadcast %cst : f32 to vector<4x288xf32>
    %c0 = arith.constant 0 : index
    %c0_0 = arith.constant 0 : index
    %c0_1 = arith.constant 0 : index
    %1 = vector.load %arg1[%c0, %c0_0, %c0_1] : memref<1x4x326xbf16, #tpu.memory_space<vmem>>, vector<1x4x326xbf16>
    %2 = vector.shape_cast %1 : vector<1x4x326xbf16> to vector<4x326xbf16>
    %c0_2 = arith.constant 0 : index
    %c0_3 = arith.constant 0 : index
    %c0_4 = arith.constant 0 : index
    %3 = vector.load %arg2[%c0_2, %c0_3, %c0_4] : memref<9x4x4xbf16, #tpu.memory_space<vmem>>, vector<9x4x4xbf16>
    %4 = vector.extract_strided_slice %3 {offsets = [0, 0, 0], sizes = [1, 4, 4], strides = [1, 1, 1]} : vector<9x4x4xbf16> to vector<1x4x4xbf16>
    %5 = vector.shape_cast %4 : vector<1x4x4xbf16> to vector<4x4xbf16>
    %6 = vector.extract_strided_slice %2 {offsets = [0, 0], sizes = [4, 288], strides = [1, 1]} : vector<4x326xbf16> to vector<4x288xbf16>
    %cst_5 = arith.constant dense<0.000000e+00> : vector<4x288xf32>
    %7 = tpu.matmul %5, %6, %cst_5 {dimension_numbers = #tpu.dot_dimension_numbers<[1], [0], [0], [1], [0, 0, 1, 1], [], []>} : vector<4x4xbf16>, vector<4x288xbf16>, vector<4x288xf32> -> vector<4x288xf32>
    %8 = arith.addf %0, %7 : vector<4x288xf32>
    %9 = vector.extract_strided_slice %3 {offsets = [1, 0, 0], sizes = [1, 4, 4], strides = [1, 1, 1]} : vector<9x4x4xbf16> to vector<1x4x4xbf16>
    %10 = vector.shape_cast %9 : vector<1x4x4xbf16> to vector<4x4xbf16>
    %11 = vector.extract_strided_slice %2 {offsets = [0, 1], sizes = [4, 288], strides = [1, 1]} : vector<4x326xbf16> to vector<4x288xbf16>
    %cst_6 = arith.constant dense<0.000000e+00> : vector<4x288xf32>
    %12 = tpu.matmul %10, %11, %cst_6 {dimension_numbers = #tpu.dot_dimension_numbers<[1], [0], [0], [1], [0, 0, 1, 1], [], []>} : vector<4x4xbf16>, vector<4x288xbf16>, vector<4x288xf32> -> vector<4x288xf32>
    %13 = arith.addf %8, %12 : vector<4x288xf32>
    %14 = vector.extract_strided_slice %3 {offsets = [2, 0, 0], sizes = [1, 4, 4], strides = [1, 1, 1]} : vector<9x4x4xbf16> to vector<1x4x4xbf16>
    %15 = vector.shape_cast %14 : vector<1x4x4xbf16> to vector<4x4xbf16>
    %16 = vector.extract_strided_slice %2 {offsets = [0, 2], sizes = [4, 288], strides = [1, 1]} : vector<4x326xbf16> to vector<4x288xbf16>
    %cst_7 = arith.constant dense<0.000000e+00> : vector<4x288xf32>
    %17 = tpu.matmul %15, %16, %cst_7 {dimension_numbers = #tpu.dot_dimension_numbers<[1], [0], [0], [1], [0, 0, 1, 1], [], []>} : vector<4x4xbf16>, vector<4x288xbf16>, vector<4x288xf32> -> vector<4x288xf32>
    %18 = arith.addf %13, %17 : vector<4x288xf32>
    %19 = vector.extract_strided_slice %3 {offsets = [3, 0, 0], sizes = [1, 4, 4], strides = [1, 1, 1]} : vector<9x4x4xbf16> to vector<1x4x4xbf16>
    %20 = vector.shape_cast %19 : vector<1x4x4xbf16> to vector<4x4xbf16>
    %21 = vector.extract_strided_slice %2 {offsets = [0, 18], sizes = [4, 288], strides = [1, 1]} : vector<4x326xbf16> to vector<4x288xbf16>
    %cst_8 = arith.constant dense<0.000000e+00> : vector<4x288xf32>
    %22 = tpu.matmul %20, %21, %cst_8 {dimension_numbers = #tpu.dot_dimension_numbers<[1], [0], [0], [1], [0, 0, 1, 1], [], []>} : vector<4x4xbf16>, vector<4x288xbf16>, vector<4x288xf32> -> vector<4x288xf32>
    %23 = arith.addf %18, %22 : vector<4x288xf32>
    %24 = vector.extract_strided_slice %3 {offsets = [4, 0, 0], sizes = [1, 4, 4], strides = [1, 1, 1]} : vector<9x4x4xbf16> to vector<1x4x4xbf16>
    %25 = vector.shape_cast %24 : vector<1x4x4xbf16> to vector<4x4xbf16>
    %26 = vector.extract_strided_slice %2 {offsets = [0, 19], sizes = [4, 288], strides = [1, 1]} : vector<4x326xbf16> to vector<4x288xbf16>
    %cst_9 = arith.constant dense<0.000000e+00> : vector<4x288xf32>
    %27 = tpu.matmul %25, %26, %cst_9 {dimension_numbers = #tpu.dot_dimension_numbers<[1], [0], [0], [1], [0, 0, 1, 1], [], []>} : vector<4x4xbf16>, vector<4x288xbf16>, vector<4x288xf32> -> vector<4x288xf32>
    %28 = arith.addf %23, %27 : vector<4x288xf32>
    %29 = vector.extract_strided_slice %3 {offsets = [5, 0, 0], sizes = [1, 4, 4], strides = [1, 1, 1]} : vector<9x4x4xbf16> to vector<1x4x4xbf16>
    %30 = vector.shape_cast %29 : vector<1x4x4xbf16> to vector<4x4xbf16>
    %31 = vector.extract_strided_slice %2 {offsets = [0, 20], sizes = [4, 288], strides = [1, 1]} : vector<4x326xbf16> to vector<4x288xbf16>
    %cst_10 = arith.constant dense<0.000000e+00> : vector<4x288xf32>
    %32 = tpu.matmul %30, %31, %cst_10 {dimension_numbers = #tpu.dot_dimension_numbers<[1], [0], [0], [1], [0, 0, 1, 1], [], []>} : vector<4x4xbf16>, vector<4x288xbf16>, vector<4x288xf32> -> vector<4x288xf32>
    %33 = arith.addf %28, %32 : vector<4x288xf32>
    %34 = vector.extract_strided_slice %3 {offsets = [6, 0, 0], sizes = [1, 4, 4], strides = [1, 1, 1]} : vector<9x4x4xbf16> to vector<1x4x4xbf16>
    %35 = vector.shape_cast %34 : vector<1x4x4xbf16> to vector<4x4xbf16>
    %36 = vector.extract_strided_slice %2 {offsets = [0, 36], sizes = [4, 288], strides = [1, 1]} : vector<4x326xbf16> to vector<4x288xbf16>
    %cst_11 = arith.constant dense<0.000000e+00> : vector<4x288xf32>
    %37 = tpu.matmul %35, %36, %cst_11 {dimension_numbers = #tpu.dot_dimension_numbers<[1], [0], [0], [1], [0, 0, 1, 1], [], []>} : vector<4x4xbf16>, vector<4x288xbf16>, vector<4x288xf32> -> vector<4x288xf32>
    %38 = arith.addf %33, %37 : vector<4x288xf32>
    %39 = vector.extract_strided_slice %3 {offsets = [7, 0, 0], sizes = [1, 4, 4], strides = [1, 1, 1]} : vector<9x4x4xbf16> to vector<1x4x4xbf16>
    %40 = vector.shape_cast %39 : vector<1x4x4xbf16> to vector<4x4xbf16>
    %41 = vector.extract_strided_slice %2 {offsets = [0, 37], sizes = [4, 288], strides = [1, 1]} : vector<4x326xbf16> to vector<4x288xbf16>
    %cst_12 = arith.constant dense<0.000000e+00> : vector<4x288xf32>
    %42 = tpu.matmul %40, %41, %cst_12 {dimension_numbers = #tpu.dot_dimension_numbers<[1], [0], [0], [1], [0, 0, 1, 1], [], []>} : vector<4x4xbf16>, vector<4x288xbf16>, vector<4x288xf32> -> vector<4x288xf32>
    %43 = arith.addf %38, %42 : vector<4x288xf32>
    %44 = vector.extract_strided_slice %3 {offsets = [8, 0, 0], sizes = [1, 4, 4], strides = [1, 1, 1]} : vector<9x4x4xbf16> to vector<1x4x4xbf16>
    %45 = vector.shape_cast %44 : vector<1x4x4xbf16> to vector<4x4xbf16>
    %46 = vector.extract_strided_slice %2 {offsets = [0, 38], sizes = [4, 288], strides = [1, 1]} : vector<4x326xbf16> to vector<4x288xbf16>
    %cst_13 = arith.constant dense<0.000000e+00> : vector<4x288xf32>
    %47 = tpu.matmul %45, %46, %cst_13 {dimension_numbers = #tpu.dot_dimension_numbers<[1], [0], [0], [1], [0, 0, 1, 1], [], []>} : vector<4x4xbf16>, vector<4x288xbf16>, vector<4x288xf32> -> vector<4x288xf32>
    %48 = arith.addf %43, %47 : vector<4x288xf32>
    %c0_14 = arith.constant 0 : index
    %c0_15 = arith.constant 0 : index
    %49 = vector.load %arg3[%c0_14, %c0_15] : memref<4x1xf32, #tpu.memory_space<vmem>>, vector<4x1xf32>
    %50 = vector.broadcast %49 : vector<4x1xf32> to vector<4x288xf32>
    %51 = arith.addf %48, %50 : vector<4x288xf32>
    %cst_16 = arith.constant 0.000000e+00 : f32
    %52 = vector.broadcast %cst_16 : f32 to vector<4x288xf32>
    %53 = arith.maximumf %51, %52 : vector<4x288xf32>
    %c0_17 = arith.constant 0 : index
    %c0_18 = arith.constant 0 : index
    %c0_19 = arith.constant 0 : index
    %54 = vector.load %arg4[%c0_17, %c0_18, %c0_19] : memref<1x4x288xf32, #tpu.memory_space<vmem>>, vector<1x4x288xf32>
    %55 = vector.shape_cast %54 : vector<1x4x288xf32> to vector<4x288xf32>
    %56 = vector.shape_cast %53 : vector<4x288xf32> to vector<1x4x288xf32>
    tpu.vector_store %arg4[%c0_17, %c0_18, %c0_19], %56 {strides = array<i32>} : memref<1x4x288xf32, #tpu.memory_space<vmem>>, vector<1x4x288xf32>,
    return
  }
  func.func @transform_0(%arg0: i32) -> (i32, i32, i32) {
    %c0_i32 = arith.constant 0 : i32
    %c0_i32_0 = arith.constant 0 : i32
    %c0_i32_1 = arith.constant 0 : i32
    return %arg0, %c0_i32, %c0_i32_0 : i32, i32, i32
  }
  func.func @transform_1(%arg0: i32) -> (i32, i32, i32) {
    %c0_i32 = arith.constant 0 : i32
    %c0_i32_0 = arith.constant 0 : i32
    %c0_i32_1 = arith.constant 0 : i32
    %c0_i32_2 = arith.constant 0 : i32
    return %c0_i32, %c0_i32_0, %c0_i32_1 : i32, i32, i32
  }
  func.func @transform_2(%arg0: i32) -> (i32, i32) {
    %c0_i32 = arith.constant 0 : i32
    %c0_i32_0 = arith.constant 0 : i32
    %c0_i32_1 = arith.constant 0 : i32
    return %c0_i32, %c0_i32_0 : i32, i32
  }
  func.func @transform_3(%arg0: i32) -> (i32, i32, i32) {
    %c0_i32 = arith.constant 0 : i32
    %c0_i32_0 = arith.constant 0 : i32
    %c0_i32_1 = arith.constant 0 : i32
    return %arg0, %c0_i32, %c0_i32_0 : i32, i32, i32
  }
}

</mosaic_0001>

<bundles_post_ra>
// kernel: up_block_forward.3
= control target key start
LH: loop header
LB: loop body
LE: loop exit
PB: predicated region body
PF: predicated region fallthrough
CT: control target
= control target key end

     0   :  { %s1298_s18 = smov 0   ;;  %s1487_s0 = inlined_call_operand.vmem [shape: bf16[2,8,64], index: 0, kind: input, shape index: {}]   ;;  %s1488_s1 = inlined_call_operand.vmem [shape: bf16[64,136], index: 1, kind: input, shape index: {}]   ;;  %s1489_s2 = inlined_call_operand.vmem [shape: bf16[136,290], index: 2, kind: input, shape index: {}]   ;;  %s1490_s3 = inlined_call_operand.vmem [shape: bf16[4,4,8], index: 3, kind: input, shape index: {}]   ;;  %s1491_s4 = inlined_call_operand.vmem [shape: f32[4,1], index: 4, kind: input, shape index: {}]   ;;  %s1492_s5 = inlined_call_operand.vmem [shape: bf16[2,4,272], index: 5, kind: output, shape index: {}]  }
   0x1 LB: > { %s1095_s19 = sadd.s32 4294967295, %s1259_s18   ;;  %p1099_p0 = scmp.ge.s32.totalorder %s1259_s18, 1  ;;  %s1259_s18 = sphi %s1298_s18, %s15_s18  }
   0x2   : > { %p186_p1 = scmp.lt.s32.totalorder %s1259_s18, 3 }
   0x4   : > { %p187_p2 = pnand %p1099_p0, %p186_p1 }
   0x5   : > { %v1206_v0 = vld [vmem:[%s1488_s1 + $0x4] ss:$8 sps:$4 sm:$0xff] (!%p187_p2)   ;;  %p213_p3 = scmp.lt.s32.totalorder (!%p187_p2), %s1095_s19, 1  ;;  %v1208_v1 = vld [vmem:[%s1488_s1] ss:$8 sps:$4 sm:$0xff] (!%p187_p2)   ;;  %v1261_v2 = vmov (!%p187_p2), 0  }
   0x6   : > { %190 = sbr.rel (%p187_p2) target bundleno = 834 (0x342), region = 40  ;;  %308 = vmatprep.mubr.bf16.mxu0 (!%p187_p2), %v1261_v2  ;;  %1204 = vset.pattern.permute.xlu1 (!%p187_p2), %v1261_v2  ;;  %v1209_v3 = vld [vmem:[%s1488_s1 + $0x14] ss:$8 sps:$4 sm:$0xff] (!%p187_p2)   ;;  %v1211_v4 = vld [vmem:[%s1488_s1 + $0x10] ss:$8 sps:$4 sm:$0xff] (!%p187_p2)   ;;  %vm272_vm0 = vcmask (!%p187_p2), 523264  }
   0x7   : > { %276 = vmatprep.subr.bf16.mxu0 (!%p187_p2), %v1206_v0  ;;  %1205 = vset.pattern.permute.xlu0 (!%p187_p2), %v1261_v2  ;;  %v1212_v5 = vld [vmem:[%s1488_s1 + $0x24] ss:$8 sps:$4 sm:$0xff] (!%p187_p2)   ;;  %v1214_v6 = vld [vmem:[%s1488_s1 + $0x20] ss:$8 sps:$4 sm:$0xff] (!%p187_p2)   ;;  %v1215_v7 = vld [vmem:[%s1488_s1 + $0x34] ss:$8 sps:$4 sm:$0xff] (!%p187_p2)  }
   0x8   : > { %277 = vmatpush1.bf16.msra.mxu0 (!%p187_p2), %v1208_v1  ;;  %v1218_v8 = vld [vmem:[%s1489_s2 + $0x4] ss:$12 sps:$4 sm:$0xff] (!%p187_p2)   ;;  %v1220_v9 = vld [vmem:[%s1489_s2] ss:$12 sps:$4 sm:$0xff] (!%p187_p2)   ;;  %v1222_v10 = vld [vmem:[%s1489_s2 + $0x1c] ss:$12 sps:$4 sm:$0xff] (!%p187_p2)  }
   0x9   : > { %278 = vmatprep.subr.bf16.mxu0 (!%p187_p2), %v1209_v3  ;;  %503 = vmatprep.subr.bf16.mxu1 (!%p187_p2), %v1218_v8  ;;  %v1224_v11 = vld [vmem:[%s1489_s2 + $0x18] ss:$12 sps:$4 sm:$0xff] (!%p187_p2)   ;;  %v1226_v13 = vld [vmem:[%s1489_s2 + $0x34] ss:$12 sps:$4 sm:$0xff] (!%p187_p2)   ;;  %v1228_v15 = vld [vmem:[%s1489_s2 + $0x30] ss:$12 sps:$4 sm:$0xff] (!%p187_p2)  }
   0xa   : > { %504 = vmatpush1.bf16.msra.mxu1 (!%p187_p2), %v1220_v9  ;;  %v1217_v12 = vld [vmem:[%s1488_s1 + $0x30] ss:$8 sps:$4 sm:$0xff] (!%p187_p2)   ;;  %v1221_v17 = vld [vmem:[%s1489_s2 + $0x8] ss:$12 sps:$4 sm:$0xff] (!%p187_p2)   ;;  %v1225_v20 = vld [vmem:[%s1489_s2 + $0x20] ss:$12 sps:$4 sm:$0xff] (!%p187_p2)  }
   0xb   : > { %505 = vmatprep.subr.bf16.mxu1 (!%p187_p2), %v1222_v10  ;;  %v1230_v16 = vld [vmem:[%s1489_s2 + $0x4c] ss:$12 sps:$4 sm:$0xff] (!%p187_p2)   ;;  %v1232_v18 = vld [vmem:[%s1489_s2 + $0x48] ss:$12 sps:$4 sm:$0xff] (!%p187_p2)   ;;  %v1234_v19 = vld [vmem:[%s1489_s2 + $0x64] ss:$12 sps:$4 sm:$0xff] (!%p187_p2)  }
   0xc   : > { %279 = vmatpush1.bf16.msra.mxu0 (!%p187_p2), %v1211_v4  ;;  %v1236_v21 = vld [vmem:[%s1489_s2 + $0x60] ss:$12 sps:$4 sm:$0xff] (!%p187_p2)   ;;  %v1238_v22 = vld [vmem:[%s1489_s2 + $0x7c] ss:$12 sps:$4 sm:$0xff] (!%p187_p2)   ;;  %v1229_v23 = vld [vmem:[%s1489_s2 + $0x38] ss:$12 sps:$4 sm:$0xff] (!%p187_p2)  }
   0xd   : > { %s1494_s19 = smov (!%p213_p3, %s1095_s19), 1  ;;  %280 = vmatprep.subr.bf16.mxu0 %v1212_v5  ;;  %v1240_v24 = vld [vmem:[%s1489_s2 + $0x78] ss:$12 sps:$4 sm:$0xff]   ;;  %v1242_v25 = vld [vmem:[%s1489_s2 + $0x94] ss:$12 sps:$4 sm:$0xff]   ;;  %vm493_vm1 = vcmask 1043456  }
   0xe   : > { %s1100_s13 = sshll.u32 %s1494_s19, 2  ;;  %506 = vmatpush1.bf16.msra.mxu1 %v1224_v11  ;;  %v1233_v26 = vld [vmem:[%s1489_s2 + $0x50] ss:$12 sps:$4 sm:$0xff]   ;;  %v1246_v28 = vld [vmem:[%s1489_s2 + $0xac] ss:$12 sps:$4 sm:$0xff]   ;;  %v351_v34 = vld [vmem:[%s1489_s2 + $0xc0] sm:$0xff] }
   0xf   : > { %s216_s22 = scalar_lea.vmem %s1487_s0, %s1100_s13  ;;  %507 = vmatprep.subr.bf16.mxu1 %v1226_v13  ;;  %v1244_v27 = vld [vmem:[%s1489_s2 + $0x90] ss:$12 sps:$4 sm:$0xff]   ;;  %v1237_v29 = vld [vmem:[%s1489_s2 + $0x68] ss:$12 sps:$4 sm:$0xff]   ;;  %v1241_v31 = vld [vmem:[%s1489_s2 + $0x80] ss:$12 sps:$4 sm:$0xff]   ;;  %v1136_v35 = vcombine.high %v351_v34, %v351_v34  ;;  %v1135_v36 = vcombine.low %v351_v34, %v351_v34 }
  0x10   : > { %281 = vmatpush1.bf16.msra.mxu0 %v1214_v6  ;;  %v223_v14 = vld [vmem:[%s216_s22] sm:$0xf]  ;;  %v1248_v30 = vld [vmem:[%s1489_s2 + $0xa8] ss:$12 sps:$4 sm:$0xff]   ;;  %v1245_v32 = vld [vmem:[%s1489_s2 + $0x98] ss:$12 sps:$4 sm:$0xff]  }
  0x11   : > { %282 = vmatprep.subr.bf16.mxu0 %v1215_v7  ;;  %v1249_v33 = vld [vmem:[%s1489_s2 + $0xb0] ss:$12 sps:$4 sm:$0xff]   ;;  %v1252_v37 = vld [vmem:[%s1489_s2 + $0xc8] ss:$0 sps:$4 sm:$0xff]   ;;  %v495_v38 = vsel %vm493_vm1, %v1135_v36, 0  ;;  %vm489_vm2 = vcmask 64512  }
  0x12   : > { %508 = vmatpush1.bf16.msra.mxu1 %v1228_v15  ;;  %v501_v39 = vsel %vm493_vm1, %v1252_v37, 0  ;;  %s1262_s23 = smov 127   ;;  %v587_v58 = vld [vmem:[%s1490_s3] sm:$0x3]  ;;  %s1263_s26 = smov 111   ;;  %vm600_vm3 = vcmask 1039360  }
  0x13   : > { %509 = vmatprep.subr.bf16.mxu1 %v1230_v16  ;;  %s1264_s27 = smov 110   ;;  %v999_v59 = vld [vmem:[%s1491_s4] sm:$0xf]  ;;  %vm795_vm4 = vcmask 908288   ;;  %v1265_v7 = vmov 0.0   ;;  %vm900_vm5 = vcmask 900096  }
  0x14   : > { %283 = vmatpush1.bf16.msra.mxu0 %v1217_v12  ;;  %v588_v4 = vld [vmem:[%s1490_s3 + $0x2] sm:$0x3]  ;;  %v589_v12 = vld [vmem:[%s1490_s3 + $0x4] sm:$0x3]  ;;  %vm1266_vm6 = vmmov 0   ;;  %vm1034_vm7 = vcmask 1041408  }
  0x15   : > { %544 = vmatprep.subr.bf16.mxu0 %v1261_v2  ;;  %vm1035_vm8 = vcmask 1043458   ;;  %s1188_s11 = smul.u32 6, %s1494_s19  ;;  %vm1037_vm10 = vcmask 128004  }
  0x16   : > { %510 = vmatpush1.bf16.msra.mxu1 %v1232_v18  ;;  %vm1036_vm9 = vmor %vm1035_vm8, %vm1034_vm7 }
  0x17   : > { %1110 = vmatmul.mubr.msk.bf16.vlgmr.msra.gmra.mrb[0].mxu0 %vm272_vm0, %v223_v14  ;;  %511 = vmatprep.subr.bf16.mxu1 %v1234_v19  ;;  %s221_s14 = scalar_lea.vmem %s1492_s5, %s1188_s11  ;;  %vm1038_vm11 = vmor %vm1037_vm10, %vm1036_vm9 }
  0x18   : > { %545 = vmatpush1.bf16.msra.mxu0 %v1221_v17 }
  0x19   : > { %546 = vmatprep.subr.bf16.mxu0 %v1261_v2 }
  0x1a   : > { %512 = vmatpush1.bf16.msra.mxu1 %v1236_v21 }
  0x1b   : > { %513 = vmatprep.subr.bf16.mxu1 %v1238_v22 }
  0x1c   : > { %547 = vmatpush1.bf16.msra.mxu0 %v1225_v20  ;;  %v590_v20 = vld [vmem:[%s1490_s3 + $0x6] sm:$0x3] }
  0x1d   : > { %548 = vmatprep.subr.bf16.mxu0 %v1261_v2 }
  0x1e   : > { %514 = vmatpush1.bf16.msra.mxu1 %v1240_v24 }
  0x1f   : > { %515 = vmatprep.subr.bf16.mxu1 %v1242_v25 }
  0x20   : > { %549 = vmatpush1.bf16.msra.mxu0 %v1229_v23 }
  0x21   : > { %550 = vmatprep.subr.bf16.mxu0 %v1261_v2 }
  0x22   : > { %516 = vmatpush1.bf16.msra.mxu1 %v1244_v27 }
  0x23   : > { %517 = vmatprep.subr.bf16.mxu1 %v1246_v28 }
  0x24   : > { %551 = vmatpush1.bf16.msra.mxu0 %v1233_v26 }
  0x25   : > { %552 = vmatprep.subr.bf16.mxu0 %v1261_v2 }
  0x26   : > { %518 = vmatpush1.bf16.msra.mxu1 %v1248_v30 }
  0x27   : > { %1138 = vmatprep.subr.msk.bf16.mxu1 %vm493_vm1, %v1136_v35 }
  0x28   : > { %553 = vmatpush1.bf16.msra.mxu0 %v1237_v29 }
  0x29   : > { %554 = vmatprep.subr.bf16.mxu0 %v1261_v2 }
  0x2a   : > { %520 = vmatpush1.bf16.msra.mxu1 %v495_v38 }
  0x2c   : > { %555 = vmatpush1.bf16.msra.mxu0 %v1241_v31 }
  0x2d   : > { %556 = vmatprep.subr.bf16.mxu0 %v1261_v2 }
  0x30   : > { %557 = vmatpush1.bf16.msra.mxu0 %v1245_v32 }
  0x31   : > { %558 = vmatprep.subr.bf16.mxu0 %v1261_v2 }
  0x34   : > { %559 = vmatpush1.bf16.msra.mxu0 %v1249_v33 }
  0x35   : > { %560 = vmatprep.subr.bf16.mxu0 %v1261_v2 }
  0x38   : > { %561 = vmatpush1.bf16.msra.mxu0 %v501_v39 }
  0xea   : > { %v310_v40 = vpop.f32.mrb[0].mxu0 }
  0xeb   : > { %v312_v41 = vpop.f32.mrb[1].mxu0  ;;  %v317_v44 = vpack.c.bf16 %v310_v40, %v310_v40 }
  0xec   : > { %v318_v42 = vpack.c.bf16 %v312_v41, %v312_v41  ;;  %v314_v43 = vpop.f32.mrb[2].mxu0 }
  0xed   : > { %v315_v45 = vpop.f32.mrb[3].mxu0 }
  0xee   : > { %1139 = vmatprep.mubr.msk.bf16.mxu1 %vm489_vm2, %v318_v42  ;;  %1140 = vmatprep.mubr.msk.bf16.mxu0 %vm489_vm2, %v318_v42 }
  0xef   : > { %536 = vmatmul.mubr.bf16.vlgmr.msra.gmra.mrb[0].mxu1 %v317_v44  ;;  %577 = vmatmul.mubr.bf16.vlgmr.msra.gmra.mrb[4].mxu0 %v317_v44 }
  0xf0   : > { %740 = vmatprep.mubr.bf16.mxu0 %v1261_v2  ;;  %647 = vmatprep.mubr.bf16.mxu1 %v1261_v2 }
 0x1c2   : > { %v537_v46 = vpop.f32.mrb[0].mxu1  ;;  %v578_v47 = vpop.f32.mrb[4].mxu0 }
 0x1c3   : > { %v584_v48 = vpack.c.bf16 %v537_v46, %v537_v46  ;;  %v1433_v49 = vpack.c.bf16 %v578_v47, %v578_v47  ;;  %v539_v50 = vpop.f32.mrb[1].mxu1  ;;  %v580_v51 = vpop.f32.mrb[5].mxu0 }
 0x1c4   : > { %v585_v52 = vpack.c.bf16 %v539_v50, %v539_v50  ;;  %v541_v53 = vpop.f32.mrb[2].mxu1  ;;  %v581_v54 = vpop.f32.mrb[6].mxu0 }
 0x1c5   : > { %594 = vrot.lane.b32.xlu0 %v584_v48, %s1262_s23  ;;  %v542_v55 = vpop.f32.mrb[3].mxu1  ;;  %598 = vrot.lane.b32.xlu1 %v1433_v49, %s1262_s23  ;;  %v582_v56 = vpop.f32.mrb[7].mxu0  ;;  %v700_v57 = vsel %vm493_vm1, %v584_v48, 0  ;;  %v706_v19 = vsel %vm493_vm1, %v1433_v49, 0 }
 0x1c6   : > { %1144 = vmatprep.subr.msk.bf16.mxu0 %vm493_vm1, %v585_v52 }
 0x1c7   : > { %709 = vmatpush1.bf16.msra.mxu0 %v700_v57 }
 0x1c9   : > { %596 = vrot.lane.b32.xlu0 %v585_v52, %s1262_s23  ;;  %789 = vrot.lane.b32.xlu1 %v584_v48, %s1263_s26 }
 0x1ca   : > { %1145 = vmatmul.mubr.msk.bf16.vlgmr.msra.gmra.mrb[8].mxu0 %vm489_vm2, %v587_v58 }
 0x1cb   : > { %842 = vmatprep.mubr.bf16.mxu0 %v1261_v2 }
 0x1cd   : > { %791 = vrot.lane.b32.xlu0 %v585_v52, %s1263_s26  ;;  %793 = vrot.lane.b32.xlu1 %v1433_v49, %s1263_s26 }
 0x1d1   : > { %894 = vrot.lane.b32.xlu0 %v584_v48, %s1264_s27  ;;  %896 = vrot.lane.b32.xlu1 %v585_v52, %s1264_s27 }
 0x1d5   : > { %898 = vrot.lane.b32.xlu0 %v1433_v49, %s1264_s27  ;;  %1002 = vperm.xlu1 %1204, %v999_v59  }
 0x237   : > { %v595_v60 = vpop.permute.xlu0 %594  ;;  %v599_v61 = vpop.permute.xlu1 %598 }
 0x238   : > { %v613_v10 = vsel %vm493_vm1, %v599_v61, 0 }
 0x23b   : > { %v597_v62 = vpop.permute.xlu0 %596  ;;  %v790_v63 = vpop.permute.xlu1 %789 }
 0x23c   : > { %v601_v0 = vsel %vm600_vm3, %v595_v60, %v597_v62  ;;  %v602_v1 = vsel %vm600_vm3, %v597_v62, %v599_v61 }
 0x23d   : > { %v607_v3 = vsel %vm493_vm1, %v601_v0, 0  ;;  %1141 = vmatprep.subr.msk.bf16.mxu1 %vm493_vm1, %v602_v1  ;;  %v1267_v0 = vmov 1983009808  }
 0x23e   : > { %616 = vmatpush1.bf16.msra.mxu1 %v607_v3  ;;  %v1019_v1 = vunpack.c.l.s4 %v1267_v0  ;;  %v1021_v3 = vlaneseq }
 0x23f   : > { %v792_v5 = vpop.permute.xlu0 %791  ;;  %v794_v6 = vpop.permute.xlu1 %793  ;;  %1164 = vmatprep.subr.bf16.mxu1 %v1265_v7 }
 0x240   : > { %v796_v8 = vsel %vm795_vm4, %v790_v63, %v792_v5  ;;  %v797_v9 = vsel %vm795_vm4, %v792_v5, %v794_v6  ;;  %v1020_v5 = vunpack.c.0.s8 %v1019_v1 }
 0x241   : > { %v802_v11 = vsel %vm493_vm1, %v796_v8, 0  ;;  %1142 = vmatmul.mubr.msk.bf16.vlgmr.msra.gmra.mrb[4].mxu1 %vm489_vm2, %v588_v4  ;;  %1147 = vmatprep.subr.msk.bf16.mxu0 %vm493_vm1, %v797_v9 }
 0x242   : > { %1165 = vmatpush3.bf16.msra.mxu1 %v613_v10  ;;  %811 = vmatpush1.bf16.msra.mxu0 %v802_v11 }
 0x243   : > { %v895_v13 = vpop.permute.xlu0 %894  ;;  %v897_v14 = vpop.permute.xlu1 %896  ;;  %1166 = vmatprep.mubr.msk.bf16.mxu1 %vm1266_vm6, %v1265_v7  ;;  %1170 = vmatprep.subr.bf16.mxu1 %v1265_v7 }
 0x244   : > { %v901_v15 = vsel %vm900_vm5, %v895_v13, %v897_v14 }
 0x245   : > { %1148 = vmatmul.mubr.msk.bf16.vlgmr.msra.gmra.mrb[12].mxu0 %vm489_vm2, %v589_v12  ;;  %v907_v18 = vsel %vm493_vm1, %v901_v15, 0 }
 0x246   : > { %947 = vmatprep.mubr.bf16.mxu0 %v1261_v2  ;;  %v808_v2 = vsel %vm493_vm1, %v794_v6, 0  ;;  %v1022_v6 = vshrl.u32 %v1021_v3, 7 }
 0x247   : > { %v899_v16 = vpop.permute.xlu0 %898 }
 0x248   : > { %v902_v17 = vsel %vm900_vm5, %v897_v14, %v899_v16  ;;  %v913_v21 = vsel %vm493_vm1, %v899_v16, 0 }
 0x249   : > { %1167 = vmatmul.mubr.msk.bf16.vlgmr.msra.gmra.mrb[8].mxu1 %vm489_vm2, %v588_v4  ;;  %1150 = vmatprep.subr.msk.bf16.mxu0 %vm493_vm1, %v902_v17 }
 0x24a   : > { %1171 = vmatpush3.bf16.msra.mxu1 %v706_v19  ;;  %916 = vmatpush1.bf16.msra.mxu0 %v907_v18 }
 0x24b   : > { %1172 = vmatprep.mubr.msk.bf16.mxu1 %vm1266_vm6, %v1265_v7  ;;  %1176 = vmatprep.subr.bf16.mxu1 %v1265_v7 }
 0x24d   : > { %1151 = vmatmul.mubr.msk.bf16.vlgmr.msra.gmra.mrb[16].mxu0 %vm489_vm2, %v590_v20 }
 0x251   : > { %1173 = vmatmul.mubr.msk.bf16.vlgmr.msra.gmra.mrb[12].mxu1 %vm489_vm2, %v587_v58 }
 0x252   : > { %1177 = vmatpush3.bf16.msra.mxu1 %v808_v2  ;;  %1178 = vmatprep.mubr.msk.bf16.mxu1 %vm1266_vm6, %v1265_v7 }
 0x253   : > { %1182 = vmatprep.subr.bf16.mxu1 %v1265_v7 }
 0x254   : > { %v1003_v43 = vpop.permute.xlu1 %1002 }
 0x259   : > { %1179 = vmatmul.mubr.msk.bf16.vlgmr.msra.gmra.mrb[16].mxu1 %vm489_vm2, %v589_v12  ;;  %v1023_v12 = vsub.s32 %v1020_v5, %v1022_v6 }
 0x25a   : > { %1183 = vmatpush3.bf16.msra.mxu1 %v913_v21  ;;  %1184 = vmatprep.mubr.msk.bf16.mxu1 %vm1266_vm6, %v1265_v7 }
 0x261   : > { %1185 = vmatmul.mubr.msk.bf16.vlgmr.msra.gmra.mrb[20].mxu1 %vm489_vm2, %v590_v20 }
 0x29d   : > { %v742_v22 = vpop.f32.mrb[8].mxu0 }
 0x29e   : > { %v744_v23 = vpop.f32.mrb[9].mxu0 }
 0x29f   : > { %v746_v24 = vpop.f32.mrb[10].mxu0 }
 0x2a0   : > { %v747_v25 = vpop.f32.mrb[11].mxu0 }
 0x314   : > { %v649_v26 = vpop.f32.mrb[4].mxu1 }
 0x315   : > { %v743_v27 = vadd.f32 %v742_v22, %v649_v26  ;;  %v651_v28 = vpop.f32.mrb[5].mxu1 }
 0x316   : > { %v745_v29 = vadd.f32 %v744_v23, %v651_v28  ;;  %v653_v30 = vpop.f32.mrb[6].mxu1 }
 0x317   : > { %v654_v31 = vpop.f32.mrb[7].mxu1 }
 0x318   : > { %v844_v32 = vpop.f32.mrb[12].mxu0 }
 0x319   : > { %v891_v33 = vadd.f32 %v844_v32, %v743_v27  ;;  %v846_v34 = vpop.f32.mrb[13].mxu0 }
 0x31a   : > { %v892_v35 = vadd.f32 %v846_v34, %v745_v29  ;;  %v848_v36 = vpop.f32.mrb[14].mxu0 }
 0x31b   : > { %v849_v37 = vpop.f32.mrb[15].mxu0 }
 0x31c   : > { %v690_v38 = vpop.f32.mrb[8].mxu1 }
 0x31d   : > { %v1168_v39 = vpop.f32.mrb[9].mxu1 }
 0x31e   : > { %v693_v40 = vpop.f32.mrb[10].mxu1 }
 0x31f   : > { %v1169_v41 = vpop.f32.mrb[11].mxu1 }
 0x320   : > { %v949_v42 = vpop.f32.mrb[16].mxu0 }
 0x321   : > { %v996_v44 = vadd.f32 %v949_v42, %v891_v33  ;;  %v951_v45 = vpop.f32.mrb[17].mxu0 }
 0x322   : > { %v997_v46 = vadd.f32 %v951_v45, %v892_v35  ;;  %v953_v47 = vpop.f32.mrb[18].mxu0 }
 0x323   : > { %v1005_v48 = vadd.f32 %v1003_v43, %v996_v44  ;;  %v954_v49 = vpop.f32.mrb[19].mxu0 }
 0x324   : > { %v1006_v50 = vadd.f32 %v1003_v43, %v997_v46  ;;  %v783_v51 = vpop.f32.mrb[12].mxu1 }
 0x325   : > { %v1008_v52 = vmax.f32 %v1005_v48, 0.0  ;;  %v784_v53 = vadd.f32 %v783_v51, %v690_v38  ;;  %v1174_v54 = vpop.f32.mrb[13].mxu1 }
 0x326   : > { %v1009_v55 = vmax.f32 %v1006_v50, 0.0  ;;  %v786_v56 = vpop.f32.mrb[14].mxu1 }
 0x327   : > { %v1175_v57 = vpop.f32.mrb[15].mxu1 }
 0x328   : > { %v1153_v58 = vpack.c.bf16 %v1009_v55, %v1008_v52 }
 0x32a   : > { %v1024_v15 = vrot.slane %v1153_v58, %v1023_v12 }
 0x32c   : > { %v885_v59 = vpop.f32.mrb[16].mxu1 }
 0x32d   : > { %v893_v60 = vadd.f32 %v885_v59, %v784_v53  ;;  %v1180_v61 = vpop.f32.mrb[17].mxu1 }
 0x32e   : > { %v888_v62 = vpop.f32.mrb[18].mxu1 }
 0x32f   : > { %v1181_v63 = vpop.f32.mrb[19].mxu1 }
 0x334   : > { %v990_v4 = vpop.f32.mrb[20].mxu1 }
 0x335   : > { %v998_v7 = vadd.f32 %v990_v4, %v893_v60  ;;  %v1186_v8 = vpop.f32.mrb[21].mxu1 }
 0x336   : > { %v993_v9 = vpop.f32.mrb[22].mxu1 }
 0x337   : > { %v1007_v10 = vadd.f32 %v1003_v43, %v998_v7  ;;  %v1187_v11 = vpop.f32.mrb[23].mxu1 }
 0x339   : > { %v1010_v13 = vmax.f32 %v1007_v10, 0.0 }
 0x33b   : > { %v1013_v14 = vpack.c.bf16 %v1010_v13, %v1010_v13 }
 0x33d   : > { %v1031_v16 = vrot.slane %v1013_v14, %v1023_v12 }
 0x33f   : > { %v1032_v17 = vcombine.low %v1024_v15, %v1031_v16 }
 0x341   : > { %1039 = vst.msk [vmem:[%s221_s14] sm:$0x3f] %vm1038_vm11, %v1032_v17 }
 0x342 PF: > { %s15_s18 = sadd.s32 1, %s1259_s18  }
 0x343   : > { %p12_p4 = scmp.ge.s32.totalorder %s15_s18, 4  }
 0x345   :  { %14 = sbr.rel (!%p12_p4) target bundleno = 1 (0x1), region = 70 }

// kernel: up_block_forward.4
= control target key start
LH: loop header
LB: loop body
LE: loop exit
PB: predicated region body
PF: predicated region fallthrough
CT: control target
= control target key end

     0   :  { %s2550_s18 = smov 0   ;;  %s2954_s0 = inlined_call_operand.vmem [shape: bf16[2,4,326], index: 0, kind: input, shape index: {}]   ;;  %s2955_s1 = inlined_call_operand.vmem [shape: bf16[2,4,326], index: 1, kind: input, shape index: {}]   ;;  %s2956_s2 = inlined_call_operand.vmem [shape: bf16[9,4,4], index: 2, kind: input, shape index: {}]   ;;  %s2957_s3 = inlined_call_operand.vmem [shape: bf16[9,4,4], index: 3, kind: input, shape index: {}]   ;;  %s2958_s4 = inlined_call_operand.vmem [shape: f32[4,1], index: 4, kind: input, shape index: {}]   ;;  %s2959_s5 = inlined_call_operand.vmem [shape: bf16[2,4,288], index: 5, kind: output, shape index: {}]  }
   0x1 LB: > { %s2267_s19 = sadd.s32 4294967295, %s2506_s18   ;;  %p2271_p0 = scmp.ge.s32.totalorder %s2506_s18, 1  ;;  %s2506_s18 = sphi %s2550_s18, %s15_s18  }
   0x2   : > { %p197_p1 = scmp.lt.s32.totalorder %s2506_s18, 3 }
   0x4   : > { %p198_p2 = pnand %p2271_p0, %p197_p1 }
   0x5   : > { %p230_p3 = scmp.lt.s32.totalorder (!%p198_p2), %s2267_s19, 1  ;;  %v261_v0 = vlaneseq (!%p198_p2)  ;;  %v2508_v1 = vmov (!%p198_p2), 1983009808   ;;  %v2509_v3 = vmov (!%p198_p2), 0.0   ;;  %vm2510_vm0 = vmmov (!%p198_p2), 0   ;;  %s2512_s24 = smov (!%p198_p2), 127  }
   0x6   : > { %201 = sbr.rel (%p198_p2) target bundleno = 506 (0x1fa), region = 40  ;;  %v259_v2 = vunpack.c.l.s4 (!%p198_p2), %v2508_v1  ;;  %2368 = vmatprep.subr.bf16.mxu1 (!%p198_p2), %v2509_v3  ;;  %2370 = vmatprep.mubr.msk.bf16.mxu1 (!%p198_p2), %vm2510_vm0, %v2509_v3  ;;  %v2511_v6 = vmov (!%p198_p2), 0   ;;  %s2513_s25 = smov (!%p198_p2), 126   ;;  %vm286_vm1 = vcmask (!%p198_p2), 1041408   ;;  %vm279_vm2 = vcmask (!%p198_p2), 1039360  }
   0x7   : > { %v262_v4 = vshrl.u32 (!%p198_p2), %v261_v0, 7  ;;  %328 = vmatprep.mubr.bf16.mxu0 (!%p198_p2), %v2511_v6  ;;  %2497 = vset.pattern.permute.xlu0 (!%p198_p2), %v2511_v6  ;;  %s2514_s26 = smov (!%p198_p2), 110   ;;  %s2515_s27 = smov (!%p198_p2), 109   ;;  %v248_v22 = vld [vmem:[%s2956_s2 + $0x2] sm:$0x3] (!%p198_p2)  ;;  %vm282_vm3 = vcmask (!%p198_p2), 31744  }
   0x8   : > { %v260_v5 = vunpack.c.0.s8 (!%p198_p2), %v259_v2  ;;  %s2516_s28 = smov (!%p198_p2), 108   ;;  %s2517_s29 = smov (!%p198_p2), 92   ;;  %vm476_vm4 = vcmask (!%p198_p2), 1031168   ;;  %v247_v32 = vld [vmem:[%s2956_s2] sm:$0x3] (!%p198_p2)  ;;  %vm581_vm5 = vcmask (!%p198_p2), 900096  }
   0x9   : > { %s2518_s30 = smov (!%p198_p2), 91   ;;  %s2519_s9 = smov (!%p198_p2), 90   ;;  %v249_v41 = vld [vmem:[%s2956_s2 + $0x4] sm:$0x3] (!%p198_p2)  ;;  %vm686_vm6 = vcmask (!%p198_p2), 891904   ;;  %vm791_vm7 = vcmask (!%p198_p2), 883712  }
   0xa   : > { %v2565_v7 = vsub.s32 (!%p198_p2), %v260_v5, %v262_v4  ;;  %v250_v50 = vld [vmem:[%s2956_s2 + $0x6] sm:$0x3] (!%p198_p2)  ;;  %v251_v58 = vld [vmem:[%s2956_s2 + $0x8] sm:$0x3] (!%p198_p2)  ;;  %vm896_vm8 = vcmask (!%p198_p2), 752640   ;;  %vm1001_vm9 = vcmask (!%p198_p2), 744448  }
   0xb   : > { %v252_v2 = vld [vmem:[%s2956_s2 + $0xa] sm:$0x3] (!%p198_p2)  ;;  %vm1106_vm10 = vcmask (!%p198_p2), 736256   ;;  %vm2195_vm11 = vcmask (!%p198_p2), 1043458   ;;  %vm2197_vm13 = vcmask (!%p198_p2), 259076  }
   0xc   : > { %vm2196_vm12 = vmor (!%p198_p2), %vm2195_vm11, %vm286_vm1 }
   0xd   : > { %s2961_s19 = smov (!%p230_p3, %s2267_s19), 1  ;;  %vm2198_vm14 = vmor %vm2197_vm13, %vm2196_vm12 }
   0xe   : > { %s2561_s20 = smul.u32 6, %s2961_s19 }
  0x10   : > { %s234_s23 = scalar_lea.vmem %s2954_s0, %s2561_s20  ;;  %s239_s8 = scalar_lea.vmem %s2955_s1, %s2561_s20 }
  0x11   : > { %v246_v8 = vld [vmem:[%s234_s23] sm:$0x3f] }
  0x12   : > { %v2572_v9 = vrot.slane %v246_v8, %v2565_v7  ;;  %v257_v10 = vcombine.high %v246_v8, %v246_v8  ;;  %v1205_v13 = vld [vmem:[%s239_s8] sm:$0x3f] }
  0x13   : > { %v2632_v14 = vrot.slane %v1205_v13, %v2565_v7  ;;  %v1216_v15 = vcombine.high %v1205_v13, %v1205_v13 }
  0x14   : > { %273 = vrot.lane.b32.xlu0 %v2572_v9, %s2512_s24  ;;  %v2577_v11 = vrot.slane %v257_v10, %v2565_v7  ;;  %v2581_v12 = vcombine.high %v2572_v9, %v2572_v9  ;;  %v381_v28 = vsel %vm286_vm1, %v2572_v9, 0 }
  0x15   : > { %v2638_v16 = vcombine.high %v2632_v14, %v2632_v14  ;;  %v2643_v17 = vrot.slane %v1216_v15, %v2565_v7 }
  0x16   : > { %277 = vrot.lane.b32.xlu1 %v2577_v11, %s2512_s24  ;;  %v387_v25 = vsel %vm286_vm1, %v2577_v11, 0 }
  0x18   : > { %275 = vrot.lane.b32.xlu0 %v2581_v12, %s2512_s24 }
  0x1a   : > { %470 = vrot.lane.b32.xlu1 %v2572_v9, %s2513_s25 }
  0x1c   : > { %472 = vrot.lane.b32.xlu0 %v2581_v12, %s2513_s25 }
  0x1e   : > { %474 = vrot.lane.b32.xlu1 %v2577_v11, %s2513_s25 }
  0x20   : > { %575 = vrot.lane.b32.xlu0 %v2572_v9, %s2514_s26 }
  0x22   : > { %577 = vrot.lane.b32.xlu1 %v2581_v12, %s2514_s26 }
  0x24   : > { %579 = vrot.lane.b32.xlu0 %v2577_v11, %s2514_s26 }
  0x26   : > { %680 = vrot.lane.b32.xlu1 %v2572_v9, %s2515_s27 }
  0x28   : > { %682 = vrot.lane.b32.xlu0 %v2581_v12, %s2515_s27 }
  0x2a   : > { %684 = vrot.lane.b32.xlu1 %v2577_v11, %s2515_s27 }
  0x2c   : > { %785 = vrot.lane.b32.xlu0 %v2572_v9, %s2516_s28 }
  0x2e   : > { %787 = vrot.lane.b32.xlu1 %v2581_v12, %s2516_s28 }
  0x30   : > { %789 = vrot.lane.b32.xlu0 %v2577_v11, %s2516_s28 }
  0x32   : > { %890 = vrot.lane.b32.xlu1 %v2572_v9, %s2517_s29 }
  0x34   : > { %892 = vrot.lane.b32.xlu0 %v2581_v12, %s2517_s29 }
  0x36   : > { %894 = vrot.lane.b32.xlu1 %v2577_v11, %s2517_s29 }
  0x38   : > { %995 = vrot.lane.b32.xlu0 %v2572_v9, %s2518_s30 }
  0x3a   : > { %997 = vrot.lane.b32.xlu1 %v2581_v12, %s2518_s30 }
  0x3c   : > { %999 = vrot.lane.b32.xlu0 %v2577_v11, %s2518_s30 }
  0x3e   : > { %1100 = vrot.lane.b32.xlu1 %v2572_v9, %s2519_s9 }
  0x40   : > { %1102 = vrot.lane.b32.xlu0 %v2581_v12, %s2519_s9 }
  0x42   : > { %1104 = vrot.lane.b32.xlu1 %v2577_v11, %s2519_s9 }
  0x44   : > { %1328 = vrot.lane.b32.xlu0 %v2632_v14, %s2512_s24 }
  0x46   : > { %1330 = vrot.lane.b32.xlu1 %v2638_v16, %s2512_s24 }
  0x48   : > { %1332 = vrot.lane.b32.xlu0 %v2643_v17, %s2512_s24 }
  0x4a   : > { %1432 = vrot.lane.b32.xlu1 %v2632_v14, %s2513_s25 }
  0x4c   : > { %1434 = vrot.lane.b32.xlu0 %v2638_v16, %s2513_s25 }
  0x4e   : > { %1436 = vrot.lane.b32.xlu1 %v2643_v17, %s2513_s25 }
  0x50   : > { %1536 = vrot.lane.b32.xlu0 %v2632_v14, %s2514_s26 }
  0x52   : > { %1538 = vrot.lane.b32.xlu1 %v2638_v16, %s2514_s26 }
  0x54   : > { %1540 = vrot.lane.b32.xlu0 %v2643_v17, %s2514_s26 }
  0x56   : > { %1640 = vrot.lane.b32.xlu1 %v2632_v14, %s2515_s27 }
  0x58   : > { %1642 = vrot.lane.b32.xlu0 %v2638_v16, %s2515_s27 }
  0x5a   : > { %1644 = vrot.lane.b32.xlu1 %v2643_v17, %s2515_s27 }
  0x5c   : > { %1744 = vrot.lane.b32.xlu0 %v2632_v14, %s2516_s28 }
  0x5e   : > { %1746 = vrot.lane.b32.xlu1 %v2638_v16, %s2516_s28 }
  0x60   : > { %1748 = vrot.lane.b32.xlu0 %v2643_v17, %s2516_s28 }
  0x62   : > { %1848 = vrot.lane.b32.xlu1 %v2632_v14, %s2517_s29 }
  0x64   : > { %1850 = vrot.lane.b32.xlu0 %v2638_v16, %s2517_s29 }
  0x66   : > { %1852 = vrot.lane.b32.xlu1 %v2643_v17, %s2517_s29  ;;  %s244_s29 = scalar_lea.vmem %s2959_s5, %s2561_s20 }
  0x68   : > { %1952 = vrot.lane.b32.xlu0 %v2632_v14, %s2518_s30 }
  0x6a   : > { %1954 = vrot.lane.b32.xlu1 %v2638_v16, %s2518_s30 }
  0x6c   : > { %1956 = vrot.lane.b32.xlu0 %v2643_v17, %s2518_s30 }
  0x6e   : > { %2056 = vrot.lane.b32.xlu1 %v2632_v14, %s2519_s9 }
  0x70   : > { %2058 = vrot.lane.b32.xlu0 %v2638_v16, %s2519_s9 }
  0x72   : > { %2060 = vrot.lane.b32.xlu1 %v2643_v17, %s2519_s9 }
  0x86   : > { %v274_v18 = vpop.permute.xlu0 %273 }
  0x88   : > { %v278_v19 = vpop.permute.xlu1 %277 }
  0x89   : > { %v294_v20 = vsel %vm286_vm1, %v278_v19, 0 }
  0x8a   : > { %v276_v21 = vpop.permute.xlu0 %275  ;;  %2369 = vmatpush3.bf16.msra.mxu1 %v294_v20 }
  0x8b   : > { %v281_v23 = vsel %vm279_vm2, %v276_v21, %v278_v19  ;;  %v280_v24 = vsel %vm279_vm2, %v274_v18, %v276_v21  ;;  %2374 = vmatprep.subr.bf16.mxu1 %v2509_v3 }
  0x8c   : > { %2275 = vmatprep.subr.msk.bf16.mxu0 %vm286_vm1, %v281_v23  ;;  %v288_v26 = vsel %vm286_vm1, %v280_v24, 0  ;;  %v471_v27 = vpop.permute.xlu1 %470 }
  0x8d   : > { %297 = vmatpush1.bf16.msra.mxu0 %v288_v26  ;;  %2371 = vmatmul.mubr.msk.bf16.vlgmr.msra.gmra.mrb[0].mxu1 %vm282_vm3, %v248_v22 }
  0x8e   : > { %2278 = vmatprep.subr.msk.bf16.mxu0 %vm286_vm1, %v2581_v12  ;;  %v473_v29 = vpop.permute.xlu0 %472  ;;  %2375 = vmatpush3.bf16.msra.mxu1 %v387_v25  ;;  %v253_v12 = vld [vmem:[%s2956_s2 + $0xc] sm:$0x3] }
  0x8f   : > { %2376 = vmatprep.mubr.msk.bf16.mxu1 %vm2510_vm0, %v2509_v3  ;;  %2380 = vmatprep.subr.bf16.mxu1 %v2509_v3  ;;  %v477_v34 = vsel %vm476_vm4, %v471_v27, %v473_v29 }
  0x90   : > { %2276 = vmatmul.mubr.msk.bf16.vlgmr.msra.gmra.mrb[0].mxu0 %vm282_vm3, %v248_v22  ;;  %v475_v30 = vpop.permute.xlu1 %474  ;;  %v483_v37 = vsel %vm286_vm1, %v477_v34, 0  ;;  %v254_v22 = vld [vmem:[%s2956_s2 + $0xe] sm:$0x3] }
  0x91   : > { %390 = vmatpush1.bf16.msra.mxu0 %v381_v28  ;;  %v478_v31 = vsel %vm476_vm4, %v473_v29, %v475_v30  ;;  %421 = vmatprep.mubr.bf16.mxu0 %v2511_v6  ;;  %v489_v35 = vsel %vm286_vm1, %v475_v30, 0  ;;  %v255_v28 = vld [vmem:[%s2956_s2 + $0x10] sm:$0x3]  ;;  %v1242_v29 = vsel %vm286_vm1, %v2643_v17, 0  ;;  %v1206_v17 = vld [vmem:[%s2957_s3] sm:$0x3] }
  0x92   : > { %2281 = vmatprep.subr.msk.bf16.mxu0 %vm286_vm1, %v478_v31  ;;  %v576_v33 = vpop.permute.xlu0 %575  ;;  %v1236_v31 = vsel %vm286_vm1, %v2632_v14, 0 }
  0x94   : > { %v578_v36 = vpop.permute.xlu1 %577 }
  0x95   : > { %2377 = vmatmul.mubr.msk.bf16.vlgmr.msra.gmra.mrb[4].mxu1 %vm282_vm3, %v247_v32  ;;  %v582_v43 = vsel %vm581_vm5, %v576_v33, %v578_v36 }
  0x96   : > { %2381 = vmatpush3.bf16.msra.mxu1 %v489_v35  ;;  %2382 = vmatprep.mubr.msk.bf16.mxu1 %vm2510_vm0, %v2509_v3  ;;  %v580_v38 = vpop.permute.xlu0 %579  ;;  %v588_v46 = vsel %vm286_vm1, %v582_v43, 0 }
  0x97   : > { %v583_v39 = vsel %vm581_vm5, %v578_v36, %v580_v38  ;;  %2386 = vmatprep.subr.bf16.mxu1 %v2509_v3  ;;  %v594_v44 = vsel %vm286_vm1, %v580_v38, 0 }
  0x98   : > { %2279 = vmatmul.mubr.msk.bf16.vlgmr.msra.gmra.mrb[4].mxu0 %vm282_vm3, %v247_v32  ;;  %v681_v40 = vpop.permute.xlu1 %680 }
  0x99   : > { %492 = vmatpush1.bf16.msra.mxu0 %v483_v37  ;;  %523 = vmatprep.mubr.bf16.mxu0 %v2511_v6 }
  0x9a   : > { %2284 = vmatprep.subr.msk.bf16.mxu0 %vm286_vm1, %v583_v39  ;;  %v683_v42 = vpop.permute.xlu0 %682 }
  0x9b   : > { %v687_v51 = vsel %vm686_vm6, %v681_v40, %v683_v42  ;;  %v1207_v40 = vld [vmem:[%s2957_s3 + $0x2] sm:$0x3] }
  0x9c   : > { %v685_v45 = vpop.permute.xlu1 %684  ;;  %v693_v54 = vsel %vm286_vm1, %v687_v51, 0 }
  0x9d   : > { %2383 = vmatmul.mubr.msk.bf16.vlgmr.msra.gmra.mrb[8].mxu1 %vm282_vm3, %v249_v41  ;;  %v688_v48 = vsel %vm686_vm6, %v683_v42, %v685_v45  ;;  %v699_v52 = vsel %vm286_vm1, %v685_v45, 0 }
  0x9e   : > { %2387 = vmatpush3.bf16.msra.mxu1 %v594_v44  ;;  %2388 = vmatprep.mubr.msk.bf16.mxu1 %vm2510_vm0, %v2509_v3  ;;  %v786_v47 = vpop.permute.xlu0 %785 }
  0x9f   : > { %2392 = vmatprep.subr.bf16.mxu1 %v2509_v3 }
  0xa0   : > { %2282 = vmatmul.mubr.msk.bf16.vlgmr.msra.gmra.mrb[8].mxu0 %vm282_vm3, %v249_v41  ;;  %v788_v49 = vpop.permute.xlu1 %787 }
  0xa1   : > { %597 = vmatpush1.bf16.msra.mxu0 %v588_v46  ;;  %628 = vmatprep.mubr.bf16.mxu0 %v2511_v6  ;;  %v792_v59 = vsel %vm791_vm7, %v786_v47, %v788_v49 }
  0xa2   : > { %2287 = vmatprep.subr.msk.bf16.mxu0 %vm286_vm1, %v688_v48  ;;  %v790_v53 = vpop.permute.xlu0 %789  ;;  %v798_v62 = vsel %vm286_vm1, %v792_v59, 0  ;;  %v1208_v48 = vld [vmem:[%s2957_s3 + $0x4] sm:$0x3] }
  0xa3   : > { %v793_v56 = vsel %vm791_vm7, %v788_v49, %v790_v53  ;;  %v804_v60 = vsel %vm286_vm1, %v790_v53, 0 }
  0xa4   : > { %v891_v55 = vpop.permute.xlu1 %890 }
  0xa5   : > { %2389 = vmatmul.mubr.msk.bf16.vlgmr.msra.gmra.mrb[12].mxu1 %vm282_vm3, %v250_v50 }
  0xa6   : > { %2393 = vmatpush3.bf16.msra.mxu1 %v699_v52  ;;  %2394 = vmatprep.mubr.msk.bf16.mxu1 %vm2510_vm0, %v2509_v3  ;;  %v893_v57 = vpop.permute.xlu0 %892 }
  0xa7   : > { %2398 = vmatprep.subr.bf16.mxu1 %v2509_v3  ;;  %v897_v4 = vsel %vm896_vm8, %v891_v55, %v893_v57 }
  0xa8   : > { %2285 = vmatmul.mubr.msk.bf16.vlgmr.msra.gmra.mrb[12].mxu0 %vm282_vm3, %v250_v50  ;;  %v895_v61 = vpop.permute.xlu1 %894  ;;  %v903_v9 = vsel %vm286_vm1, %v897_v4, 0 }
  0xa9   : > { %702 = vmatpush1.bf16.msra.mxu0 %v693_v54  ;;  %733 = vmatprep.mubr.bf16.mxu0 %v2511_v6  ;;  %v898_v0 = vsel %vm896_vm8, %v893_v57, %v895_v61  ;;  %v909_v5 = vsel %vm286_vm1, %v895_v61, 0  ;;  %v1209_v57 = vld [vmem:[%s2957_s3 + $0x6] sm:$0x3] }
  0xaa   : > { %2290 = vmatprep.subr.msk.bf16.mxu0 %vm286_vm1, %v793_v56  ;;  %v996_v63 = vpop.permute.xlu0 %995  ;;  %v2160_v56 = vld [vmem:[%s2958_s4] sm:$0xf] }
  0xab   : > { %2163 = vperm.xlu0 %2497, %v2160_v56  }
  0xac   : > { %v998_v1 = vpop.permute.xlu1 %997 }
  0xad   : > { %2395 = vmatmul.mubr.msk.bf16.vlgmr.msra.gmra.mrb[16].mxu1 %vm282_vm3, %v251_v58  ;;  %v1002_v13 = vsel %vm1001_vm9, %v996_v63, %v998_v1 }
  0xae   : > { %2399 = vmatpush3.bf16.msra.mxu1 %v804_v60  ;;  %2400 = vmatprep.mubr.msk.bf16.mxu1 %vm2510_vm0, %v2509_v3  ;;  %v1000_v8 = vpop.permute.xlu0 %999  ;;  %v1008_v20 = vsel %vm286_vm1, %v1002_v13, 0 }
  0xaf   : > { %2404 = vmatprep.subr.bf16.mxu1 %v2509_v3  ;;  %v1003_v11 = vsel %vm1001_vm9, %v998_v1, %v1000_v8  ;;  %v1014_v15 = vsel %vm286_vm1, %v1000_v8, 0  ;;  %v1210_v1 = vld [vmem:[%s2957_s3 + $0x8] sm:$0x3] }
  0xb0   : > { %2288 = vmatmul.mubr.msk.bf16.vlgmr.msra.gmra.mrb[16].mxu0 %vm282_vm3, %v251_v58  ;;  %v1101_v10 = vpop.permute.xlu1 %1100 }
  0xb1   : > { %807 = vmatpush1.bf16.msra.mxu0 %v798_v62  ;;  %838 = vmatprep.mubr.bf16.mxu0 %v2511_v6 }
  0xb2   : > { %2293 = vmatprep.subr.msk.bf16.mxu0 %vm286_vm1, %v898_v0  ;;  %v1103_v18 = vpop.permute.xlu0 %1102 }
  0xb3   : > { %v1107_v23 = vsel %vm1106_vm10, %v1101_v10, %v1103_v18 }
  0xb4   : > { %v1105_v19 = vpop.permute.xlu1 %1104  ;;  %v1113_v25 = vsel %vm286_vm1, %v1107_v23, 0 }
  0xb5   : > { %2401 = vmatmul.mubr.msk.bf16.vlgmr.msra.gmra.mrb[20].mxu1 %vm282_vm3, %v252_v2  ;;  %v1108_v21 = vsel %vm1106_vm10, %v1103_v18, %v1105_v19  ;;  %v1119_v24 = vsel %vm286_vm1, %v1105_v19, 0 }
  0xb6   : > { %2405 = vmatpush3.bf16.msra.mxu1 %v909_v5  ;;  %2406 = vmatprep.mubr.msk.bf16.mxu1 %vm2510_vm0, %v2509_v3  ;;  %v1329_v26 = vpop.permute.xlu0 %1328 }
  0xb7   : > { %2410 = vmatprep.subr.bf16.mxu1 %v2509_v3 }
  0xb8   : > { %2291 = vmatmul.mubr.msk.bf16.vlgmr.msra.gmra.mrb[20].mxu0 %vm282_vm3, %v252_v2  ;;  %v1331_v27 = vpop.permute.xlu1 %1330 }
  0xb9   : > { %912 = vmatpush1.bf16.msra.mxu0 %v903_v9  ;;  %943 = vmatprep.mubr.bf16.mxu0 %v2511_v6  ;;  %v1334_v14 = vsel %vm279_vm2, %v1329_v26, %v1331_v27 }
  0xba   : > { %2296 = vmatprep.subr.msk.bf16.mxu0 %vm286_vm1, %v1003_v11  ;;  %v1333_v30 = vpop.permute.xlu0 %1332  ;;  %v1340_v36 = vsel %vm286_vm1, %v1334_v14, 0 }
  0xbb   : > { %v1335_v33 = vsel %vm279_vm2, %v1331_v27, %v1333_v30  ;;  %v1346_v34 = vsel %vm286_vm1, %v1333_v30, 0 }
  0xbc   : > { %v1433_v32 = vpop.permute.xlu1 %1432 }
  0xbd   : > { %2407 = vmatmul.mubr.msk.bf16.vlgmr.msra.gmra.mrb[24].mxu1 %vm282_vm3, %v253_v12 }
  0xbe   : > { %2411 = vmatpush3.bf16.msra.mxu1 %v1014_v15  ;;  %2412 = vmatprep.mubr.msk.bf16.mxu1 %vm2510_vm0, %v2509_v3 }
  0xbf   : > { %2416 = vmatprep.subr.bf16.mxu1 %v2509_v3 }
  0xc0   : > { %2294 = vmatmul.mubr.msk.bf16.vlgmr.msra.gmra.mrb[24].mxu0 %vm282_vm3, %v253_v12  ;;  %v1437_v35 = vpop.permute.xlu1 %1436  ;;  %v1211_v12 = vld [vmem:[%s2957_s3 + $0xa] sm:$0x3] }
  0xc1   : > { %1017 = vmatpush1.bf16.msra.mxu0 %v1008_v20  ;;  %1048 = vmatprep.mubr.bf16.mxu0 %v2511_v6  ;;  %v1450_v42 = vsel %vm286_vm1, %v1437_v35, 0 }
  0xc2   : > { %2299 = vmatprep.subr.msk.bf16.mxu0 %vm286_vm1, %v1108_v21 }
  0xc4   : > { %v1539_v39 = vpop.permute.xlu1 %1538 }
  0xc5   : > { %2413 = vmatmul.mubr.msk.bf16.vlgmr.msra.gmra.mrb[28].mxu1 %vm282_vm3, %v254_v22 }
  0xc6   : > { %2417 = vmatpush3.bf16.msra.mxu1 %v1119_v24  ;;  %2418 = vmatprep.mubr.msk.bf16.mxu1 %vm2510_vm0, %v2509_v3 }
  0xc7   : > { %2422 = vmatprep.subr.bf16.mxu1 %v2509_v3 }
  0xc8   : > { %2297 = vmatmul.mubr.msk.bf16.vlgmr.msra.gmra.mrb[28].mxu0 %vm282_vm3, %v254_v22  ;;  %v1641_v45 = vpop.permute.xlu1 %1640  ;;  %v1212_v22 = vld [vmem:[%s2957_s3 + $0xc] sm:$0x3] }
  0xc9   : > { %1122 = vmatpush1.bf16.msra.mxu0 %v1113_v25  ;;  %1153 = vmatprep.mubr.bf16.mxu0 %v2511_v6 }
  0xca   : > { %2302 = vmatprep.subr.msk.bf16.mxu0 %vm286_vm1, %v2638_v16  ;;  %v1435_v16 = vpop.permute.xlu0 %1434 }
  0xcb   : > { %v1439_v38 = vsel %vm476_vm4, %v1435_v16, %v1437_v35  ;;  %v1438_v41 = vsel %vm476_vm4, %v1433_v32, %v1435_v16 }
  0xcc   : > { %v1444_v44 = vsel %vm286_vm1, %v1438_v41, 0  ;;  %v1645_v51 = vpop.permute.xlu1 %1644 }
  0xcd   : > { %2419 = vmatmul.mubr.msk.bf16.vlgmr.msra.gmra.mrb[32].mxu1 %vm282_vm3, %v255_v28  ;;  %v1658_v59 = vsel %vm286_vm1, %v1645_v51, 0 }
  0xce   : > { %2423 = vmatpush3.bf16.msra.mxu1 %v1242_v29  ;;  %2424 = vmatprep.mubr.msk.bf16.mxu1 %vm2510_vm0, %v2509_v3  ;;  %v1537_v37 = vpop.permute.xlu0 %1536  ;;  %v1213_v29 = vld [vmem:[%s2957_s3 + $0xe] sm:$0x3] }
  0xcf   : > { %2428 = vmatprep.subr.bf16.mxu1 %v2509_v3  ;;  %v1542_v49 = vsel %vm581_vm5, %v1537_v37, %v1539_v39 }
  0xd0   : > { %2300 = vmatmul.mubr.msk.bf16.vlgmr.msra.gmra.mrb[32].mxu0 %vm282_vm3, %v255_v28  ;;  %v1548_v52 = vsel %vm286_vm1, %v1542_v49, 0  ;;  %v1747_v55 = vpop.permute.xlu1 %1746 }
  0xd1   : > { %1245 = vmatpush1.bf16.msra.mxu0 %v1236_v31  ;;  %1276 = vmatprep.mubr.bf16.mxu0 %v2511_v6 }
  0xd2   : > { %2305 = vmatprep.subr.msk.bf16.mxu0 %vm286_vm1, %v1335_v33  ;;  %v1541_v43 = vpop.permute.xlu0 %1540  ;;  %v1214_v33 = vld [vmem:[%s2957_s3 + $0x10] sm:$0x3] }
  0xd3   : > { %v1543_v46 = vsel %vm581_vm5, %v1539_v39, %v1541_v43  ;;  %v1554_v50 = vsel %vm286_vm1, %v1541_v43, 0 }
  0xd4   : > { %v1849_v62 = vpop.permute.xlu1 %1848 }
  0xd5   : > { %2425 = vmatmul.mubr.msk.bf16.vlgmr.msra.gmra.mrb[36].mxu1 %vm282_vm3, %v1206_v17 }
  0xd6   : > { %2429 = vmatpush3.bf16.msra.mxu1 %v1346_v34  ;;  %2430 = vmatprep.mubr.msk.bf16.mxu1 %vm2510_vm0, %v2509_v3  ;;  %v1643_v47 = vpop.permute.xlu0 %1642 }
  0xd7   : > { %2434 = vmatprep.subr.bf16.mxu1 %v2509_v3  ;;  %v1647_v54 = vsel %vm686_vm6, %v1643_v47, %v1645_v51  ;;  %v1646_v58 = vsel %vm686_vm6, %v1641_v45, %v1643_v47 }
  0xd8   : > { %2303 = vmatmul.mubr.msk.bf16.vlgmr.msra.gmra.mrb[36].mxu0 %vm282_vm3, %v1206_v17  ;;  %v1652_v61 = vsel %vm286_vm1, %v1646_v58, 0  ;;  %v1853_v5 = vpop.permute.xlu1 %1852 }
  0xd9   : > { %1349 = vmatpush1.bf16.msra.mxu0 %v1340_v36  ;;  %1380 = vmatprep.mubr.bf16.mxu0 %v2511_v6  ;;  %v1866_v15 = vsel %vm286_vm1, %v1853_v5, 0 }
  0xda   : > { %2308 = vmatprep.subr.msk.bf16.mxu0 %vm286_vm1, %v1439_v38  ;;  %v1745_v53 = vpop.permute.xlu0 %1744 }
  0xdb   : > { %v1750_v2 = vsel %vm791_vm7, %v1745_v53, %v1747_v55 }
  0xdc   : > { %v1756_v8 = vsel %vm286_vm1, %v1750_v2, 0  ;;  %v1955_v11 = vpop.permute.xlu1 %1954 }
  0xdd   : > { %2431 = vmatmul.mubr.msk.bf16.vlgmr.msra.gmra.mrb[40].mxu1 %vm282_vm3, %v1207_v40 }
  0xde   : > { %2435 = vmatpush3.bf16.msra.mxu1 %v1450_v42  ;;  %2436 = vmatprep.mubr.msk.bf16.mxu1 %vm2510_vm0, %v2509_v3  ;;  %v1749_v60 = vpop.permute.xlu0 %1748 }
  0xdf   : > { %2440 = vmatprep.subr.bf16.mxu1 %v2509_v3  ;;  %v1751_v63 = vsel %vm791_vm7, %v1747_v55, %v1749_v60  ;;  %v1762_v4 = vsel %vm286_vm1, %v1749_v60, 0 }
  0xe0   : > { %2306 = vmatmul.mubr.msk.bf16.vlgmr.msra.gmra.mrb[40].mxu0 %vm282_vm3, %v1207_v40  ;;  %v2057_v20 = vpop.permute.xlu1 %2056 }
  0xe1   : > { %1453 = vmatpush1.bf16.msra.mxu0 %v1444_v44  ;;  %1484 = vmatprep.mubr.bf16.mxu0 %v2511_v6 }
  0xe2   : > { %2311 = vmatprep.subr.msk.bf16.mxu0 %vm286_vm1, %v1543_v46  ;;  %v1851_v0 = vpop.permute.xlu0 %1850 }
  0xe3   : > { %v1855_v10 = vsel %vm896_vm8, %v1851_v0, %v1853_v5  ;;  %v1854_v13 = vsel %vm896_vm8, %v1849_v62, %v1851_v0 }
  0xe4   : > { %v1860_v19 = vsel %vm286_vm1, %v1854_v13, 0  ;;  %v2061_v26 = vpop.permute.xlu1 %2060 }
  0xe5   : > { %2437 = vmatmul.mubr.msk.bf16.vlgmr.msra.gmra.mrb[44].mxu1 %vm282_vm3, %v1208_v48  ;;  %v2074_v31 = vsel %vm286_vm1, %v2061_v26, 0 }
  0xe6   : > { %2441 = vmatpush3.bf16.msra.mxu1 %v1554_v50  ;;  %2442 = vmatprep.mubr.msk.bf16.mxu1 %vm2510_vm0, %v2509_v3  ;;  %v1953_v9 = vpop.permute.xlu0 %1952 }
  0xe7   : > { %2446 = vmatprep.subr.bf16.mxu1 %v2509_v3  ;;  %v1958_v23 = vsel %vm1001_vm9, %v1953_v9, %v1955_v11 }
  0xe8   : > { %2309 = vmatmul.mubr.msk.bf16.vlgmr.msra.gmra.mrb[44].mxu0 %vm282_vm3, %v1208_v48  ;;  %v1964_v27 = vsel %vm286_vm1, %v1958_v23, 0 }
  0xe9   : > { %1557 = vmatpush1.bf16.msra.mxu0 %v1548_v52  ;;  %1588 = vmatprep.mubr.bf16.mxu0 %v2511_v6 }
  0xea   : > { %2314 = vmatprep.subr.msk.bf16.mxu0 %vm286_vm1, %v1647_v54  ;;  %v1957_v18 = vpop.permute.xlu0 %1956 }
  0xeb   : > { %v1959_v21 = vsel %vm1001_vm9, %v1955_v11, %v1957_v18  ;;  %v1970_v24 = vsel %vm286_vm1, %v1957_v18, 0 }
  0xed   : > { %2443 = vmatmul.mubr.msk.bf16.vlgmr.msra.gmra.mrb[48].mxu1 %vm282_vm3, %v1209_v57 }
  0xee   : > { %2447 = vmatpush3.bf16.msra.mxu1 %v1658_v59  ;;  %2448 = vmatprep.mubr.msk.bf16.mxu1 %vm2510_vm0, %v2509_v3  ;;  %v2059_v25 = vpop.permute.xlu0 %2058 }
  0xef   : > { %2452 = vmatprep.subr.bf16.mxu1 %v2509_v3  ;;  %v2063_v28 = vsel %vm1106_vm10, %v2059_v25, %v2061_v26  ;;  %v2062_v30 = vsel %vm1106_vm10, %v2057_v20, %v2059_v25 }
  0xf0   : > { %2312 = vmatmul.mubr.msk.bf16.vlgmr.msra.gmra.mrb[48].mxu0 %vm282_vm3, %v1209_v57  ;;  %v2068_v32 = vsel %vm286_vm1, %v2062_v30, 0 }
  0xf1   : > { %1661 = vmatpush1.bf16.msra.mxu0 %v1652_v61  ;;  %1692 = vmatprep.mubr.bf16.mxu0 %v2511_v6 }
  0xf2   : > { %2317 = vmatprep.subr.msk.bf16.mxu0 %vm286_vm1, %v1751_v63 }
  0xf5   : > { %2449 = vmatmul.mubr.msk.bf16.vlgmr.msra.gmra.mrb[52].mxu1 %vm282_vm3, %v1210_v1 }
  0xf6   : > { %2453 = vmatpush3.bf16.msra.mxu1 %v1762_v4  ;;  %2454 = vmatprep.mubr.msk.bf16.mxu1 %vm2510_vm0, %v2509_v3 }
  0xf7   : > { %2458 = vmatprep.subr.bf16.mxu1 %v2509_v3 }
  0xf8   : > { %2315 = vmatmul.mubr.msk.bf16.vlgmr.msra.gmra.mrb[52].mxu0 %vm282_vm3, %v1210_v1 }
  0xf9   : > { %1765 = vmatpush1.bf16.msra.mxu0 %v1756_v8  ;;  %1796 = vmatprep.mubr.bf16.mxu0 %v2511_v6 }
  0xfa   : > { %2320 = vmatprep.subr.msk.bf16.mxu0 %vm286_vm1, %v1855_v10 }
  0xfd   : > { %2455 = vmatmul.mubr.msk.bf16.vlgmr.msra.gmra.mrb[56].mxu1 %vm282_vm3, %v1211_v12 }
  0xfe   : > { %2459 = vmatpush3.bf16.msra.mxu1 %v1866_v15  ;;  %2460 = vmatprep.mubr.msk.bf16.mxu1 %vm2510_vm0, %v2509_v3 }
  0xff   : > { %2464 = vmatprep.subr.bf16.mxu1 %v2509_v3 }
 0x100   : > { %2318 = vmatmul.mubr.msk.bf16.vlgmr.msra.gmra.mrb[56].mxu0 %vm282_vm3, %v1211_v12 }
 0x101   : > { %1869 = vmatpush1.bf16.msra.mxu0 %v1860_v19  ;;  %1900 = vmatprep.mubr.bf16.mxu0 %v2511_v6 }
 0x102   : > { %2323 = vmatprep.subr.msk.bf16.mxu0 %vm286_vm1, %v1959_v21 }
 0x105   : > { %2461 = vmatmul.mubr.msk.bf16.vlgmr.msra.gmra.mrb[60].mxu1 %vm282_vm3, %v1212_v22 }
 0x106   : > { %2465 = vmatpush3.bf16.msra.mxu1 %v1970_v24  ;;  %2466 = vmatprep.mubr.msk.bf16.mxu1 %vm2510_vm0, %v2509_v3 }
 0x107   : > { %2470 = vmatprep.subr.bf16.mxu1 %v2509_v3 }
 0x108   : > { %2321 = vmatmul.mubr.msk.bf16.vlgmr.msra.gmra.mrb[60].mxu0 %vm282_vm3, %v1212_v22 }
 0x109   : > { %1973 = vmatpush1.bf16.msra.mxu0 %v1964_v27  ;;  %2004 = vmatprep.mubr.bf16.mxu0 %v2511_v6 }
 0x10a   : > { %2326 = vmatprep.subr.msk.bf16.mxu0 %vm286_vm1, %v2063_v28 }
 0x10d   : > { %2467 = vmatmul.mubr.msk.bf16.vlgmr.msra.gmra.mrb[64].mxu1 %vm282_vm3, %v1213_v29 }
 0x10e   : > { %2471 = vmatpush3.bf16.msra.mxu1 %v2074_v31  ;;  %2472 = vmatprep.mubr.msk.bf16.mxu1 %vm2510_vm0, %v2509_v3 }
 0x110   : > { %2324 = vmatmul.mubr.msk.bf16.vlgmr.msra.gmra.mrb[64].mxu0 %vm282_vm3, %v1213_v29 }
 0x111   : > { %2077 = vmatpush1.bf16.msra.mxu0 %v2068_v32  ;;  %2108 = vmatprep.mubr.bf16.mxu0 %v2511_v6 }
 0x115   : > { %2473 = vmatmul.mubr.msk.bf16.vlgmr.msra.gmra.mrb[68].mxu1 %vm282_vm3, %v1214_v33 }
 0x118   : > { %2327 = vmatmul.mubr.msk.bf16.vlgmr.msra.gmra.mrb[68].mxu0 %vm282_vm3, %v1214_v33 }
 0x160   : > { %v371_v16 = vpop.f32.mrb[0].mxu1 }
 0x161   : > { %v2372_v17 = vpop.f32.mrb[1].mxu1 }
 0x162   : > { %v374_v14 = vpop.f32.mrb[2].mxu1 }
 0x163   : > { %v330_v34 = vpop.f32.mrb[0].mxu0  ;;  %v2373_v35 = vpop.f32.mrb[3].mxu1 }
 0x164   : > { %v332_v36 = vpop.f32.mrb[1].mxu0 }
 0x165   : > { %v334_v3 = vpop.f32.mrb[2].mxu0 }
 0x166   : > { %v335_v37 = vpop.f32.mrb[3].mxu0 }
 0x168   : > { %v464_v38 = vpop.f32.mrb[4].mxu1 }
 0x169   : > { %v465_v39 = vadd.f32 %v464_v38, %v371_v16  ;;  %v2378_v40 = vpop.f32.mrb[5].mxu1 }
 0x16a   : > { %v467_v6 = vpop.f32.mrb[6].mxu1 }
 0x16b   : > { %v423_v41 = vpop.f32.mrb[4].mxu0  ;;  %v2379_v42 = vpop.f32.mrb[7].mxu1 }
 0x16c   : > { %v424_v43 = vadd.f32 %v423_v41, %v330_v34  ;;  %v425_v44 = vpop.f32.mrb[5].mxu0 }
 0x16d   : > { %v426_v45 = vadd.f32 %v425_v44, %v332_v36  ;;  %v427_v46 = vpop.f32.mrb[6].mxu0 }
 0x16e   : > { %v428_v47 = vpop.f32.mrb[7].mxu0 }
 0x170   : > { %v566_v48 = vpop.f32.mrb[8].mxu1 }
 0x171   : > { %v574_v49 = vadd.f32 %v566_v48, %v465_v39  ;;  %v2384_v50 = vpop.f32.mrb[9].mxu1 }
 0x172   : > { %v569_v51 = vpop.f32.mrb[10].mxu1 }
 0x173   : > { %v525_v52 = vpop.f32.mrb[8].mxu0  ;;  %v2385_v53 = vpop.f32.mrb[11].mxu1 }
 0x174   : > { %v572_v54 = vadd.f32 %v525_v52, %v424_v43  ;;  %v527_v55 = vpop.f32.mrb[9].mxu0 }
 0x175   : > { %v573_v56 = vadd.f32 %v527_v55, %v426_v45  ;;  %v529_v57 = vpop.f32.mrb[10].mxu0 }
 0x176   : > { %v530_v58 = vpop.f32.mrb[11].mxu0 }
 0x178   : > { %v671_v59 = vpop.f32.mrb[12].mxu1 }
 0x179   : > { %v679_v60 = vadd.f32 %v671_v59, %v574_v49  ;;  %v2390_v61 = vpop.f32.mrb[13].mxu1 }
 0x17a   : > { %v674_v62 = vpop.f32.mrb[14].mxu1 }
 0x17b   : > { %v630_v63 = vpop.f32.mrb[12].mxu0  ;;  %v2391_v0 = vpop.f32.mrb[15].mxu1 }
 0x17c   : > { %v677_v1 = vadd.f32 %v630_v63, %v572_v54  ;;  %v632_v2 = vpop.f32.mrb[13].mxu0 }
 0x17d   : > { %v678_v4 = vadd.f32 %v632_v2, %v573_v56  ;;  %v634_v5 = vpop.f32.mrb[14].mxu0 }
 0x17e   : > { %v635_v8 = vpop.f32.mrb[15].mxu0 }
 0x180   : > { %v776_v9 = vpop.f32.mrb[16].mxu1 }
 0x181   : > { %v784_v10 = vadd.f32 %v776_v9, %v679_v60  ;;  %v2396_v11 = vpop.f32.mrb[17].mxu1 }
 0x182   : > { %v779_v12 = vpop.f32.mrb[18].mxu1 }
 0x183   : > { %v735_v13 = vpop.f32.mrb[16].mxu0  ;;  %v2397_v15 = vpop.f32.mrb[19].mxu1 }
 0x184   : > { %v782_v18 = vadd.f32 %v735_v13, %v677_v1  ;;  %v737_v19 = vpop.f32.mrb[17].mxu0 }
 0x185   : > { %v783_v20 = vadd.f32 %v737_v19, %v678_v4  ;;  %v739_v21 = vpop.f32.mrb[18].mxu0 }
 0x186   : > { %v740_v22 = vpop.f32.mrb[19].mxu0 }
 0x188   : > { %v881_v23 = vpop.f32.mrb[20].mxu1 }
 0x189   : > { %v889_v24 = vadd.f32 %v881_v23, %v784_v10  ;;  %v2402_v25 = vpop.f32.mrb[21].mxu1 }
 0x18a   : > { %v884_v26 = vpop.f32.mrb[22].mxu1 }
 0x18b   : > { %v840_v27 = vpop.f32.mrb[20].mxu0  ;;  %v2403_v28 = vpop.f32.mrb[23].mxu1 }
 0x18c   : > { %v887_v29 = vadd.f32 %v840_v27, %v782_v18  ;;  %v842_v30 = vpop.f32.mrb[21].mxu0 }
 0x18d   : > { %v888_v31 = vadd.f32 %v842_v30, %v783_v20  ;;  %v844_v32 = vpop.f32.mrb[22].mxu0 }
 0x18e   : > { %v845_v33 = vpop.f32.mrb[23].mxu0 }
 0x190   : > { %v986_v16 = vpop.f32.mrb[24].mxu1 }
 0x191   : > { %v994_v17 = vadd.f32 %v986_v16, %v889_v24  ;;  %v2408_v14 = vpop.f32.mrb[25].mxu1 }
 0x192   : > { %v989_v34 = vpop.f32.mrb[26].mxu1 }
 0x193   : > { %v945_v35 = vpop.f32.mrb[24].mxu0  ;;  %v2409_v36 = vpop.f32.mrb[27].mxu1 }
 0x194   : > { %v992_v3 = vadd.f32 %v945_v35, %v887_v29  ;;  %v947_v37 = vpop.f32.mrb[25].mxu0 }
 0x195   : > { %v993_v38 = vadd.f32 %v947_v37, %v888_v31  ;;  %v949_v39 = vpop.f32.mrb[26].mxu0 }
 0x196   : > { %v950_v40 = vpop.f32.mrb[27].mxu0 }
 0x198   : > { %v1091_v6 = vpop.f32.mrb[28].mxu1 }
 0x199   : > { %v1099_v41 = vadd.f32 %v1091_v6, %v994_v17  ;;  %v2414_v42 = vpop.f32.mrb[29].mxu1 }
 0x19a   : > { %v1094_v43 = vpop.f32.mrb[30].mxu1 }
 0x19b   : > { %v1050_v44 = vpop.f32.mrb[28].mxu0  ;;  %v2415_v45 = vpop.f32.mrb[31].mxu1 }
 0x19c   : > { %v1097_v46 = vadd.f32 %v1050_v44, %v992_v3  ;;  %v1052_v47 = vpop.f32.mrb[29].mxu0 }
 0x19d   : > { %v1098_v48 = vadd.f32 %v1052_v47, %v993_v38  ;;  %v1054_v49 = vpop.f32.mrb[30].mxu0 }
 0x19e   : > { %v1055_v50 = vpop.f32.mrb[31].mxu0 }
 0x1a0   : > { %v1196_v51 = vpop.f32.mrb[32].mxu1 }
 0x1a1   : > { %v1204_v52 = vadd.f32 %v1196_v51, %v1099_v41  ;;  %v2420_v53 = vpop.f32.mrb[33].mxu1 }
 0x1a2   : > { %v1199_v54 = vpop.f32.mrb[34].mxu1 }
 0x1a3   : > { %v1155_v55 = vpop.f32.mrb[32].mxu0  ;;  %v2421_v56 = vpop.f32.mrb[35].mxu1 }
 0x1a4   : > { %v1202_v57 = vadd.f32 %v1155_v55, %v1097_v46  ;;  %v1157_v58 = vpop.f32.mrb[33].mxu0 }
 0x1a5   : > { %v1203_v59 = vadd.f32 %v1157_v58, %v1098_v48  ;;  %v1159_v60 = vpop.f32.mrb[34].mxu0 }
 0x1a6   : > { %v1160_v61 = vpop.f32.mrb[35].mxu0 }
 0x1a8   : > { %v1319_v62 = vpop.f32.mrb[36].mxu1 }
 0x1a9   : > { %v1327_v63 = vadd.f32 %v1319_v62, %v1204_v52  ;;  %v2426_v0 = vpop.f32.mrb[37].mxu1 }
 0x1aa   : > { %v1322_v1 = vpop.f32.mrb[38].mxu1 }
 0x1ab   : > { %v1278_v2 = vpop.f32.mrb[36].mxu0  ;;  %v2427_v4 = vpop.f32.mrb[39].mxu1 }
 0x1ac   : > { %v1325_v5 = vadd.f32 %v1278_v2, %v1202_v57  ;;  %v1280_v8 = vpop.f32.mrb[37].mxu0 }
 0x1ad   : > { %v1326_v9 = vadd.f32 %v1280_v8, %v1203_v59  ;;  %v1282_v10 = vpop.f32.mrb[38].mxu0 }
 0x1ae   : > { %v1283_v11 = vpop.f32.mrb[39].mxu0 }
 0x1b0   : > { %v1423_v12 = vpop.f32.mrb[40].mxu1 }
 0x1b1   : > { %v1431_v13 = vadd.f32 %v1423_v12, %v1327_v63  ;;  %v2432_v15 = vpop.f32.mrb[41].mxu1 }
 0x1b2   : > { %v1426_v18 = vpop.f32.mrb[42].mxu1 }
 0x1b3   : > { %v1382_v19 = vpop.f32.mrb[40].mxu0  ;;  %v2433_v20 = vpop.f32.mrb[43].mxu1 }
 0x1b4   : > { %v1429_v21 = vadd.f32 %v1382_v19, %v1325_v5  ;;  %v1384_v22 = vpop.f32.mrb[41].mxu0 }
 0x1b5   : > { %v1430_v23 = vadd.f32 %v1384_v22, %v1326_v9  ;;  %v1386_v24 = vpop.f32.mrb[42].mxu0 }
 0x1b6   : > { %v1387_v25 = vpop.f32.mrb[43].mxu0 }
 0x1b8   : > { %v1527_v26 = vpop.f32.mrb[44].mxu1 }
 0x1b9   : > { %v1535_v27 = vadd.f32 %v1527_v26, %v1431_v13  ;;  %v2438_v28 = vpop.f32.mrb[45].mxu1 }
 0x1ba   : > { %v1530_v29 = vpop.f32.mrb[46].mxu1 }
 0x1bb   : > { %v1486_v30 = vpop.f32.mrb[44].mxu0  ;;  %v2439_v31 = vpop.f32.mrb[47].mxu1 }
 0x1bc   : > { %v1533_v32 = vadd.f32 %v1486_v30, %v1429_v21  ;;  %v1488_v33 = vpop.f32.mrb[45].mxu0  ;;  %v2164_v30 = vpop.permute.xlu0 %2163 }
 0x1bd   : > { %v1534_v16 = vadd.f32 %v1488_v33, %v1430_v23  ;;  %v1490_v17 = vpop.f32.mrb[46].mxu0 }
 0x1be   : > { %v1491_v14 = vpop.f32.mrb[47].mxu0 }
 0x1c0   : > { %v1631_v34 = vpop.f32.mrb[48].mxu1 }
 0x1c1   : > { %v1639_v35 = vadd.f32 %v1631_v34, %v1535_v27  ;;  %v2444_v36 = vpop.f32.mrb[49].mxu1 }
 0x1c2   : > { %v1634_v3 = vpop.f32.mrb[50].mxu1 }
 0x1c3   : > { %v1590_v37 = vpop.f32.mrb[48].mxu0  ;;  %v2445_v38 = vpop.f32.mrb[51].mxu1 }
 0x1c4   : > { %v1637_v39 = vadd.f32 %v1590_v37, %v1533_v32  ;;  %v1592_v40 = vpop.f32.mrb[49].mxu0 }
 0x1c5   : > { %v1638_v6 = vadd.f32 %v1592_v40, %v1534_v16  ;;  %v1594_v41 = vpop.f32.mrb[50].mxu0 }
 0x1c6   : > { %v1595_v42 = vpop.f32.mrb[51].mxu0 }
 0x1c8   : > { %v1735_v43 = vpop.f32.mrb[52].mxu1 }
 0x1c9   : > { %v1743_v44 = vadd.f32 %v1735_v43, %v1639_v35  ;;  %v2450_v45 = vpop.f32.mrb[53].mxu1 }
 0x1ca   : > { %v1738_v46 = vpop.f32.mrb[54].mxu1 }
 0x1cb   : > { %v1694_v47 = vpop.f32.mrb[52].mxu0  ;;  %v2451_v48 = vpop.f32.mrb[55].mxu1 }
 0x1cc   : > { %v1741_v49 = vadd.f32 %v1694_v47, %v1637_v39  ;;  %v1696_v50 = vpop.f32.mrb[53].mxu0 }
 0x1cd   : > { %v1742_v51 = vadd.f32 %v1696_v50, %v1638_v6  ;;  %v1698_v52 = vpop.f32.mrb[54].mxu0 }
 0x1ce   : > { %v1699_v53 = vpop.f32.mrb[55].mxu0 }
 0x1d0   : > { %v1839_v54 = vpop.f32.mrb[56].mxu1 }
 0x1d1   : > { %v1847_v55 = vadd.f32 %v1839_v54, %v1743_v44  ;;  %v2456_v56 = vpop.f32.mrb[57].mxu1 }
 0x1d2   : > { %v1842_v57 = vpop.f32.mrb[58].mxu1 }
 0x1d3   : > { %v1798_v58 = vpop.f32.mrb[56].mxu0  ;;  %v2457_v59 = vpop.f32.mrb[59].mxu1 }
 0x1d4   : > { %v1845_v60 = vadd.f32 %v1798_v58, %v1741_v49  ;;  %v1800_v61 = vpop.f32.mrb[57].mxu0 }
 0x1d5   : > { %v1846_v62 = vadd.f32 %v1800_v61, %v1742_v51  ;;  %v1802_v63 = vpop.f32.mrb[58].mxu0 }
 0x1d6   : > { %v1803_v0 = vpop.f32.mrb[59].mxu0 }
 0x1d8   : > { %v1943_v1 = vpop.f32.mrb[60].mxu1 }
 0x1d9   : > { %v1951_v2 = vadd.f32 %v1943_v1, %v1847_v55  ;;  %v2462_v4 = vpop.f32.mrb[61].mxu1 }
 0x1da   : > { %v1946_v5 = vpop.f32.mrb[62].mxu1 }
 0x1db   : > { %v1902_v8 = vpop.f32.mrb[60].mxu0  ;;  %v2463_v9 = vpop.f32.mrb[63].mxu1 }
 0x1dc   : > { %v1949_v10 = vadd.f32 %v1902_v8, %v1845_v60  ;;  %v1904_v11 = vpop.f32.mrb[61].mxu0 }
 0x1dd   : > { %v1950_v12 = vadd.f32 %v1904_v11, %v1846_v62  ;;  %v1906_v13 = vpop.f32.mrb[62].mxu0 }
 0x1de   : > { %v1907_v15 = vpop.f32.mrb[63].mxu0 }
 0x1e0   : > { %v2047_v18 = vpop.f32.mrb[64].mxu1 }
 0x1e1   : > { %v2055_v19 = vadd.f32 %v2047_v18, %v1951_v2  ;;  %v2468_v20 = vpop.f32.mrb[65].mxu1 }
 0x1e2   : > { %v2050_v21 = vpop.f32.mrb[66].mxu1 }
 0x1e3   : > { %v2006_v22 = vpop.f32.mrb[64].mxu0  ;;  %v2469_v23 = vpop.f32.mrb[67].mxu1 }
 0x1e4   : > { %v2053_v24 = vadd.f32 %v2006_v22, %v1949_v10  ;;  %v2008_v25 = vpop.f32.mrb[65].mxu0 }
 0x1e5   : > { %v2054_v26 = vadd.f32 %v2008_v25, %v1950_v12  ;;  %v2010_v27 = vpop.f32.mrb[66].mxu0 }
 0x1e6   : > { %v2011_v28 = vpop.f32.mrb[67].mxu0 }
 0x1e8   : > { %v2151_v29 = vpop.f32.mrb[68].mxu1 }
 0x1e9   : > { %v2159_v31 = vadd.f32 %v2151_v29, %v2055_v19  ;;  %v2474_v32 = vpop.f32.mrb[69].mxu1 }
 0x1ea   : > { %v2154_v33 = vpop.f32.mrb[70].mxu1 }
 0x1eb   : > { %v2168_v16 = vadd.f32 %v2164_v30, %v2159_v31  ;;  %v2110_v17 = vpop.f32.mrb[68].mxu0  ;;  %v2475_v14 = vpop.f32.mrb[71].mxu1 }
 0x1ec   : > { %v2157_v34 = vadd.f32 %v2110_v17, %v2053_v24  ;;  %v2112_v35 = vpop.f32.mrb[69].mxu0 }
 0x1ed   : > { %v2171_v36 = vmax.f32 %v2168_v16, 0.0  ;;  %v2158_v3 = vadd.f32 %v2112_v35, %v2054_v26  ;;  %v2114_v37 = vpop.f32.mrb[70].mxu0 }
 0x1ee   : > { %v2166_v38 = vadd.f32 %v2164_v30, %v2157_v34  ;;  %v2115_v39 = vpop.f32.mrb[71].mxu0 }
 0x1ef   : > { %v2167_v40 = vadd.f32 %v2164_v30, %v2158_v3  ;;  %v2174_v41 = vpack.c.bf16 %v2171_v36, %v2171_v36 }
 0x1f0   : > { %v2169_v6 = vmax.f32 %v2166_v38, 0.0 }
 0x1f1   : > { %v2170_v42 = vmax.f32 %v2167_v40, 0.0  ;;  %v2192_v44 = vrot.slane %v2174_v41, %v2565_v7 }
 0x1f3   : > { %v2329_v43 = vpack.c.bf16 %v2170_v42, %v2169_v6 }
 0x1f5   : > { %v2185_v45 = vrot.slane %v2329_v43, %v2565_v7 }
 0x1f7   : > { %v2193_v46 = vcombine.low %v2185_v45, %v2192_v44 }
 0x1f9   : > { %2199 = vst.msk [vmem:[%s244_s29] sm:$0x3f] %vm2198_vm14, %v2193_v46 }
 0x1fa PF: > { %s15_s18 = sadd.s32 1, %s2506_s18  }
 0x1fb   : > { %p12_p4 = scmp.ge.s32.totalorder %s15_s18, 4  }
 0x1fd   :  { %14 = sbr.rel (!%p12_p4) target bundleno = 1 (0x1), region = 73 }

// kernel: up_block_forward.5
= control target key start
LH: loop header
LB: loop body
LE: loop exit
PB: predicated region body
PF: predicated region fallthrough
CT: control target
= control target key end

     0   :  { %s1377_s12 = smov 0   ;;  %s1512_s0 = inlined_call_operand.vmem [shape: bf16[2,4,326], index: 0, kind: input, shape index: {}]   ;;  %s1513_s1 = inlined_call_operand.vmem [shape: bf16[9,4,4], index: 1, kind: input, shape index: {}]   ;;  %s1514_s2 = inlined_call_operand.vmem [shape: f32[4,1], index: 2, kind: input, shape index: {}]   ;;  %s1515_s3 = inlined_call_operand.vmem [shape: f32[2,4,288], index: 3, kind: output, shape index: {}]  }
   0x1 LB: > { %s1205_s13 = sadd.s32 4294967295, %s1343_s12   ;;  %p1209_p0 = scmp.ge.s32.totalorder %s1343_s12, 1  ;;  %s1343_s12 = sphi %s1377_s12, %s13_s12  }
   0x2   : > { %p137_p1 = scmp.lt.s32.totalorder %s1343_s12, 3 }
   0x4   : > { %p138_p2 = pnand %p1209_p0, %p137_p1 }
   0x5   : > { %p161_p3 = scmp.lt.s32.totalorder (!%p138_p2), %s1205_s13, 1  ;;  %v187_v0 = vlaneseq (!%p138_p2)  ;;  %v1345_v1 = vmov (!%p138_p2), 1983009808   ;;  %v1346_v3 = vmov (!%p138_p2), 0.0   ;;  %vm1347_vm0 = vmmov (!%p138_p2), 0   ;;  %s1349_s18 = smov (!%p138_p2), 127  }
   0x6   : > { %141 = sbr.rel (%p138_p2) target bundleno = 430 (0x1ae), region = 32  ;;  %v185_v2 = vunpack.c.l.s4 (!%p138_p2), %v1345_v1  ;;  %1259 = vmatprep.subr.bf16.mxu1 (!%p138_p2), %v1346_v3  ;;  %1261 = vmatprep.mubr.msk.bf16.mxu1 (!%p138_p2), %vm1347_vm0, %v1346_v3  ;;  %v1348_v6 = vmov (!%p138_p2), 0   ;;  %s1350_s19 = smov (!%p138_p2), 126   ;;  %v1131_v13 = vld [vmem:[%s1514_s2] sm:$0xf] (!%p138_p2)  ;;  %vm212_vm1 = vcmask (!%p138_p2), 1041408  }
   0x7   : > { %v188_v4 = vshrl.u32 (!%p138_p2), %v187_v0, 7  ;;  %254 = vmatprep.mubr.bf16.mxu0 (!%p138_p2), %v1348_v6  ;;  %1335 = vset.pattern.permute.xlu0 (!%p138_p2), %v1348_v6  ;;  %s1351_s20 = smov (!%p138_p2), 110   ;;  %s1352_s21 = smov (!%p138_p2), 109   ;;  %vm205_vm2 = vcmask (!%p138_p2), 1039360   ;;  %v174_v18 = vld [vmem:[%s1513_s1 + $0x2] sm:$0x3] (!%p138_p2) }
   0x8   : > { %v186_v5 = vunpack.c.0.s8 (!%p138_p2), %v185_v2  ;;  %s1353_s22 = smov (!%p138_p2), 108   ;;  %s1354_s23 = smov (!%p138_p2), 92   ;;  %vm208_vm3 = vcmask (!%p138_p2), 31744   ;;  %vm402_vm4 = vcmask (!%p138_p2), 1031168   ;;  %v173_v28 = vld [vmem:[%s1513_s1] sm:$0x3] (!%p138_p2) }
   0x9   : > { %s1355_s24 = smov (!%p138_p2), 91   ;;  %s1356_s25 = smov (!%p138_p2), 90   ;;  %vm507_vm5 = vcmask (!%p138_p2), 900096   ;;  %v175_v37 = vld [vmem:[%s1513_s1 + $0x4] sm:$0x3] (!%p138_p2)  ;;  %vm612_vm6 = vcmask (!%p138_p2), 891904  }
   0xa   : > { %v189_v7 = vsub.s32 (!%p138_p2), %v186_v5, %v188_v4  ;;  %v176_v46 = vld [vmem:[%s1513_s1 + $0x6] sm:$0x3] (!%p138_p2)  ;;  %vm717_vm7 = vcmask (!%p138_p2), 883712   ;;  %v177_v54 = vld [vmem:[%s1513_s1 + $0x8] sm:$0x3] (!%p138_p2)  ;;  %vm822_vm8 = vcmask (!%p138_p2), 752640  }
   0xb   : > { %v178_v62 = vld [vmem:[%s1513_s1 + $0xa] sm:$0x3] (!%p138_p2)  ;;  %vm927_vm9 = vcmask (!%p138_p2), 744448   ;;  %vm1032_vm10 = vcmask (!%p138_p2), 736256   ;;  %vm1148_vm11 = vcmask (!%p138_p2), 257024  }
   0xd   : > { %s1517_s13 = smov (!%p161_p3, %s1205_s13), 1 }
   0xe   : > { %s1313_s14 = smul.u32 6, %s1517_s13 }
  0x10   : > { %s165_s17 = scalar_lea.vmem %s1512_s0, %s1313_s14 }
  0x11   : > { %v172_v8 = vld [vmem:[%s165_s17] sm:$0x3f] }
  0x12   : > { %v190_v9 = vrot.slane %v172_v8, %v189_v7  ;;  %v183_v10 = vcombine.high %v172_v8, %v172_v8 }
  0x14   : > { %199 = vrot.lane.b32.xlu0 %v190_v9, %s1349_s18  ;;  %v197_v11 = vrot.slane %v183_v10, %v189_v7  ;;  %v198_v12 = vcombine.high %v190_v9, %v190_v9  ;;  %v307_v24 = vsel %vm212_vm1, %v190_v9, 0  ;;  %v179_v7 = vld [vmem:[%s1513_s1 + $0xc] sm:$0x3] }
  0x16   : > { %203 = vrot.lane.b32.xlu1 %v197_v11, %s1349_s18  ;;  %v313_v21 = vsel %vm212_vm1, %v197_v11, 0 }
  0x18   : > { %201 = vrot.lane.b32.xlu0 %v198_v12, %s1349_s18 }
  0x1a   : > { %396 = vrot.lane.b32.xlu1 %v190_v9, %s1350_s19 }
  0x1c   : > { %398 = vrot.lane.b32.xlu0 %v198_v12, %s1350_s19 }
  0x1e   : > { %400 = vrot.lane.b32.xlu1 %v197_v11, %s1350_s19 }
  0x20   : > { %501 = vrot.lane.b32.xlu0 %v190_v9, %s1351_s20 }
  0x22   : > { %503 = vrot.lane.b32.xlu1 %v198_v12, %s1351_s20 }
  0x24   : > { %505 = vrot.lane.b32.xlu0 %v197_v11, %s1351_s20 }
  0x26   : > { %606 = vrot.lane.b32.xlu1 %v190_v9, %s1352_s21 }
  0x28   : > { %608 = vrot.lane.b32.xlu0 %v198_v12, %s1352_s21 }
  0x2a   : > { %610 = vrot.lane.b32.xlu1 %v197_v11, %s1352_s21  ;;  %s1314_s21 = smul.u32 12, %s1517_s13 }
  0x2c   : > { %711 = vrot.lane.b32.xlu0 %v190_v9, %s1353_s22 }
  0x2e   : > { %713 = vrot.lane.b32.xlu1 %v198_v12, %s1353_s22 }
  0x30   : > { %715 = vrot.lane.b32.xlu0 %v197_v11, %s1353_s22 }
  0x32   : > { %816 = vrot.lane.b32.xlu1 %v190_v9, %s1354_s23 }
  0x34   : > { %818 = vrot.lane.b32.xlu0 %v198_v12, %s1354_s23 }
  0x36   : > { %820 = vrot.lane.b32.xlu1 %v197_v11, %s1354_s23 }
  0x38   : > { %921 = vrot.lane.b32.xlu0 %v190_v9, %s1355_s24 }
  0x3a   : > { %923 = vrot.lane.b32.xlu1 %v198_v12, %s1355_s24 }
  0x3c   : > { %925 = vrot.lane.b32.xlu0 %v197_v11, %s1355_s24  ;;  %s170_s24 = scalar_lea.vmem %s1515_s3, %s1314_s21 }
  0x3e   : > { %1026 = vrot.lane.b32.xlu1 %v190_v9, %s1356_s25 }
  0x40   : > { %1028 = vrot.lane.b32.xlu0 %v198_v12, %s1356_s25 }
  0x42   : > { %1030 = vrot.lane.b32.xlu1 %v197_v11, %s1356_s25 }
  0x44   : > { %1134 = vperm.xlu0 %1335, %v1131_v13  }
  0x86   : > { %v200_v14 = vpop.permute.xlu0 %199 }
  0x88   : > { %v204_v15 = vpop.permute.xlu1 %203 }
  0x89   : > { %v220_v16 = vsel %vm212_vm1, %v204_v15, 0 }
  0x8a   : > { %v202_v17 = vpop.permute.xlu0 %201  ;;  %1260 = vmatpush3.bf16.msra.mxu1 %v220_v16 }
  0x8b   : > { %v207_v19 = vsel %vm205_vm2, %v202_v17, %v204_v15  ;;  %v206_v20 = vsel %vm205_vm2, %v200_v14, %v202_v17  ;;  %1265 = vmatprep.subr.bf16.mxu1 %v1346_v3  ;;  %v180_v14 = vld [vmem:[%s1513_s1 + $0xe] sm:$0x3] }
  0x8c   : > { %1212 = vmatprep.subr.msk.bf16.mxu0 %vm212_vm1, %v207_v19  ;;  %v214_v22 = vsel %vm212_vm1, %v206_v20, 0  ;;  %v397_v23 = vpop.permute.xlu1 %396 }
  0x8d   : > { %223 = vmatpush1.bf16.msra.mxu0 %v214_v22  ;;  %1262 = vmatmul.mubr.msk.bf16.vlgmr.msra.gmra.mrb[0].mxu1 %vm208_vm3, %v174_v18 }
  0x8e   : > { %1215 = vmatprep.subr.msk.bf16.mxu0 %vm212_vm1, %v198_v12  ;;  %v399_v25 = vpop.permute.xlu0 %398  ;;  %1266 = vmatpush3.bf16.msra.mxu1 %v313_v21 }
  0x8f   : > { %1267 = vmatprep.mubr.msk.bf16.mxu1 %vm1347_vm0, %v1346_v3  ;;  %1271 = vmatprep.subr.bf16.mxu1 %v1346_v3  ;;  %v403_v30 = vsel %vm402_vm4, %v397_v23, %v399_v25 }
  0x90   : > { %1213 = vmatmul.mubr.msk.bf16.vlgmr.msra.gmra.mrb[0].mxu0 %vm208_vm3, %v174_v18  ;;  %v401_v26 = vpop.permute.xlu1 %400  ;;  %v409_v33 = vsel %vm212_vm1, %v403_v30, 0  ;;  %v181_v18 = vld [vmem:[%s1513_s1 + $0x10] sm:$0x3] }
  0x91   : > { %316 = vmatpush1.bf16.msra.mxu0 %v307_v24  ;;  %v404_v27 = vsel %vm402_vm4, %v399_v25, %v401_v26  ;;  %347 = vmatprep.mubr.bf16.mxu0 %v1348_v6  ;;  %v415_v31 = vsel %vm212_vm1, %v401_v26, 0 }
  0x92   : > { %1218 = vmatprep.subr.msk.bf16.mxu0 %vm212_vm1, %v404_v27  ;;  %v502_v29 = vpop.permute.xlu0 %501 }
  0x94   : > { %v504_v32 = vpop.permute.xlu1 %503 }
  0x95   : > { %1268 = vmatmul.mubr.msk.bf16.vlgmr.msra.gmra.mrb[4].mxu1 %vm208_vm3, %v173_v28  ;;  %v508_v39 = vsel %vm507_vm5, %v502_v29, %v504_v32 }
  0x96   : > { %1272 = vmatpush3.bf16.msra.mxu1 %v415_v31  ;;  %1273 = vmatprep.mubr.msk.bf16.mxu1 %vm1347_vm0, %v1346_v3  ;;  %v506_v34 = vpop.permute.xlu0 %505  ;;  %v514_v42 = vsel %vm212_vm1, %v508_v39, 0 }
  0x97   : > { %v509_v35 = vsel %vm507_vm5, %v504_v32, %v506_v34  ;;  %1277 = vmatprep.subr.bf16.mxu1 %v1346_v3  ;;  %v520_v40 = vsel %vm212_vm1, %v506_v34, 0 }
  0x98   : > { %1216 = vmatmul.mubr.msk.bf16.vlgmr.msra.gmra.mrb[4].mxu0 %vm208_vm3, %v173_v28  ;;  %v607_v36 = vpop.permute.xlu1 %606 }
  0x99   : > { %418 = vmatpush1.bf16.msra.mxu0 %v409_v33  ;;  %449 = vmatprep.mubr.bf16.mxu0 %v1348_v6 }
  0x9a   : > { %1221 = vmatprep.subr.msk.bf16.mxu0 %vm212_vm1, %v509_v35  ;;  %v609_v38 = vpop.permute.xlu0 %608 }
  0x9b   : > { %v613_v47 = vsel %vm612_vm6, %v607_v36, %v609_v38 }
  0x9c   : > { %v611_v41 = vpop.permute.xlu1 %610  ;;  %v619_v50 = vsel %vm212_vm1, %v613_v47, 0 }
  0x9d   : > { %1274 = vmatmul.mubr.msk.bf16.vlgmr.msra.gmra.mrb[8].mxu1 %vm208_vm3, %v175_v37  ;;  %v614_v44 = vsel %vm612_vm6, %v609_v38, %v611_v41  ;;  %v625_v48 = vsel %vm212_vm1, %v611_v41, 0 }
  0x9e   : > { %1278 = vmatpush3.bf16.msra.mxu1 %v520_v40  ;;  %1279 = vmatprep.mubr.msk.bf16.mxu1 %vm1347_vm0, %v1346_v3  ;;  %v712_v43 = vpop.permute.xlu0 %711 }
  0x9f   : > { %1283 = vmatprep.subr.bf16.mxu1 %v1346_v3 }
  0xa0   : > { %1219 = vmatmul.mubr.msk.bf16.vlgmr.msra.gmra.mrb[8].mxu0 %vm208_vm3, %v175_v37  ;;  %v714_v45 = vpop.permute.xlu1 %713 }
  0xa1   : > { %523 = vmatpush1.bf16.msra.mxu0 %v514_v42  ;;  %554 = vmatprep.mubr.bf16.mxu0 %v1348_v6  ;;  %v718_v55 = vsel %vm717_vm7, %v712_v43, %v714_v45 }
  0xa2   : > { %1224 = vmatprep.subr.msk.bf16.mxu0 %vm212_vm1, %v614_v44  ;;  %v716_v49 = vpop.permute.xlu0 %715  ;;  %v724_v58 = vsel %vm212_vm1, %v718_v55, 0 }
  0xa3   : > { %v719_v52 = vsel %vm717_vm7, %v714_v45, %v716_v49  ;;  %v730_v56 = vsel %vm212_vm1, %v716_v49, 0 }
  0xa4   : > { %v817_v51 = vpop.permute.xlu1 %816 }
  0xa5   : > { %1280 = vmatmul.mubr.msk.bf16.vlgmr.msra.gmra.mrb[12].mxu1 %vm208_vm3, %v176_v46 }
  0xa6   : > { %1284 = vmatpush3.bf16.msra.mxu1 %v625_v48  ;;  %1285 = vmatprep.mubr.msk.bf16.mxu1 %vm1347_vm0, %v1346_v3  ;;  %v819_v53 = vpop.permute.xlu0 %818 }
  0xa7   : > { %1289 = vmatprep.subr.bf16.mxu1 %v1346_v3  ;;  %v823_v63 = vsel %vm822_vm8, %v817_v51, %v819_v53 }
  0xa8   : > { %1222 = vmatmul.mubr.msk.bf16.vlgmr.msra.gmra.mrb[12].mxu0 %vm208_vm3, %v176_v46  ;;  %v821_v57 = vpop.permute.xlu1 %820  ;;  %v829_v2 = vsel %vm212_vm1, %v823_v63, 0 }
  0xa9   : > { %628 = vmatpush1.bf16.msra.mxu0 %v619_v50  ;;  %659 = vmatprep.mubr.bf16.mxu0 %v1348_v6  ;;  %v824_v60 = vsel %vm822_vm8, %v819_v53, %v821_v57  ;;  %v835_v0 = vsel %vm212_vm1, %v821_v57, 0 }
  0xaa   : > { %1227 = vmatprep.subr.msk.bf16.mxu0 %vm212_vm1, %v719_v52  ;;  %v922_v59 = vpop.permute.xlu0 %921 }
  0xac   : > { %v924_v61 = vpop.permute.xlu1 %923 }
  0xad   : > { %1286 = vmatmul.mubr.msk.bf16.vlgmr.msra.gmra.mrb[16].mxu1 %vm208_vm3, %v177_v54  ;;  %v928_v8 = vsel %vm927_vm9, %v922_v59, %v924_v61 }
  0xae   : > { %1290 = vmatpush3.bf16.msra.mxu1 %v730_v56  ;;  %1291 = vmatprep.mubr.msk.bf16.mxu1 %vm1347_vm0, %v1346_v3  ;;  %v926_v1 = vpop.permute.xlu0 %925  ;;  %v934_v12 = vsel %vm212_vm1, %v928_v8, 0 }
  0xaf   : > { %1295 = vmatprep.subr.bf16.mxu1 %v1346_v3  ;;  %v929_v5 = vsel %vm927_vm9, %v924_v61, %v926_v1  ;;  %v940_v9 = vsel %vm212_vm1, %v926_v1, 0 }
  0xb0   : > { %1225 = vmatmul.mubr.msk.bf16.vlgmr.msra.gmra.mrb[16].mxu0 %vm208_vm3, %v177_v54  ;;  %v1027_v4 = vpop.permute.xlu1 %1026 }
  0xb1   : > { %733 = vmatpush1.bf16.msra.mxu0 %v724_v58  ;;  %764 = vmatprep.mubr.bf16.mxu0 %v1348_v6 }
  0xb2   : > { %1230 = vmatprep.subr.msk.bf16.mxu0 %vm212_vm1, %v824_v60  ;;  %v1029_v10 = vpop.permute.xlu0 %1028 }
  0xb3   : > { %v1033_v15 = vsel %vm1032_vm10, %v1027_v4, %v1029_v10 }
  0xb4   : > { %v1031_v11 = vpop.permute.xlu1 %1030  ;;  %v1039_v17 = vsel %vm212_vm1, %v1033_v15, 0 }
  0xb5   : > { %1292 = vmatmul.mubr.msk.bf16.vlgmr.msra.gmra.mrb[20].mxu1 %vm208_vm3, %v178_v62  ;;  %v1034_v13 = vsel %vm1032_vm10, %v1029_v10, %v1031_v11  ;;  %v1045_v16 = vsel %vm212_vm1, %v1031_v11, 0 }
  0xb6   : > { %1296 = vmatpush3.bf16.msra.mxu1 %v835_v0  ;;  %1297 = vmatprep.mubr.msk.bf16.mxu1 %vm1347_vm0, %v1346_v3 }
  0xb7   : > { %1301 = vmatprep.subr.bf16.mxu1 %v1346_v3 }
  0xb8   : > { %1228 = vmatmul.mubr.msk.bf16.vlgmr.msra.gmra.mrb[20].mxu0 %vm208_vm3, %v178_v62 }
  0xb9   : > { %838 = vmatpush1.bf16.msra.mxu0 %v829_v2  ;;  %869 = vmatprep.mubr.bf16.mxu0 %v1348_v6 }
  0xba   : > { %1233 = vmatprep.subr.msk.bf16.mxu0 %vm212_vm1, %v929_v5 }
  0xbd   : > { %1298 = vmatmul.mubr.msk.bf16.vlgmr.msra.gmra.mrb[24].mxu1 %vm208_vm3, %v179_v7 }
  0xbe   : > { %1302 = vmatpush3.bf16.msra.mxu1 %v940_v9  ;;  %1303 = vmatprep.mubr.msk.bf16.mxu1 %vm1347_vm0, %v1346_v3 }
  0xbf   : > { %1307 = vmatprep.subr.bf16.mxu1 %v1346_v3 }
  0xc0   : > { %1231 = vmatmul.mubr.msk.bf16.vlgmr.msra.gmra.mrb[24].mxu0 %vm208_vm3, %v179_v7 }
  0xc1   : > { %943 = vmatpush1.bf16.msra.mxu0 %v934_v12  ;;  %974 = vmatprep.mubr.bf16.mxu0 %v1348_v6 }
  0xc2   : > { %1236 = vmatprep.subr.msk.bf16.mxu0 %vm212_vm1, %v1034_v13 }
  0xc5   : > { %1304 = vmatmul.mubr.msk.bf16.vlgmr.msra.gmra.mrb[28].mxu1 %vm208_vm3, %v180_v14 }
  0xc6   : > { %1308 = vmatpush3.bf16.msra.mxu1 %v1045_v16  ;;  %1309 = vmatprep.mubr.msk.bf16.mxu1 %vm1347_vm0, %v1346_v3 }
  0xc8   : > { %1234 = vmatmul.mubr.msk.bf16.vlgmr.msra.gmra.mrb[28].mxu0 %vm208_vm3, %v180_v14 }
  0xc9   : > { %1048 = vmatpush1.bf16.msra.mxu0 %v1039_v17  ;;  %1079 = vmatprep.mubr.bf16.mxu0 %v1348_v6 }
  0xcd   : > { %1310 = vmatmul.mubr.msk.bf16.vlgmr.msra.gmra.mrb[32].mxu1 %vm208_vm3, %v181_v18 }
  0xd0   : > { %1237 = vmatmul.mubr.msk.bf16.vlgmr.msra.gmra.mrb[32].mxu0 %vm208_vm3, %v181_v18 }
 0x160   : > { %v297_v19 = vpop.f32.mrb[0].mxu1 }
 0x161   : > { %v1263_v20 = vpop.f32.mrb[1].mxu1 }
 0x162   : > { %v300_v21 = vpop.f32.mrb[2].mxu1 }
 0x163   : > { %v256_v22 = vpop.f32.mrb[0].mxu0  ;;  %v1264_v23 = vpop.f32.mrb[3].mxu1 }
 0x164   : > { %v258_v24 = vpop.f32.mrb[1].mxu0 }
 0x165   : > { %v260_v3 = vpop.f32.mrb[2].mxu0 }
 0x166   : > { %v261_v25 = vpop.f32.mrb[3].mxu0 }
 0x168   : > { %v390_v26 = vpop.f32.mrb[4].mxu1 }
 0x169   : > { %v391_v27 = vadd.f32 %v390_v26, %v297_v19  ;;  %v1269_v28 = vpop.f32.mrb[5].mxu1 }
 0x16a   : > { %v393_v6 = vpop.f32.mrb[6].mxu1 }
 0x16b   : > { %v349_v29 = vpop.f32.mrb[4].mxu0  ;;  %v1270_v30 = vpop.f32.mrb[7].mxu1 }
 0x16c   : > { %v350_v31 = vadd.f32 %v349_v29, %v256_v22  ;;  %v351_v32 = vpop.f32.mrb[5].mxu0 }
 0x16d   : > { %v352_v33 = vadd.f32 %v351_v32, %v258_v24  ;;  %v353_v34 = vpop.f32.mrb[6].mxu0 }
 0x16e   : > { %v354_v35 = vpop.f32.mrb[7].mxu0 }
 0x170   : > { %v492_v36 = vpop.f32.mrb[8].mxu1 }
 0x171   : > { %v500_v37 = vadd.f32 %v492_v36, %v391_v27  ;;  %v1275_v38 = vpop.f32.mrb[9].mxu1 }
 0x172   : > { %v495_v39 = vpop.f32.mrb[10].mxu1 }
 0x173   : > { %v451_v40 = vpop.f32.mrb[8].mxu0  ;;  %v1276_v41 = vpop.f32.mrb[11].mxu1 }
 0x174   : > { %v498_v42 = vadd.f32 %v451_v40, %v350_v31  ;;  %v453_v43 = vpop.f32.mrb[9].mxu0  ;;  %v1135_v39 = vpop.permute.xlu0 %1134 }
 0x175   : > { %v499_v44 = vadd.f32 %v453_v43, %v352_v33  ;;  %v455_v45 = vpop.f32.mrb[10].mxu0 }
 0x176   : > { %v456_v46 = vpop.f32.mrb[11].mxu0 }
 0x178   : > { %v597_v47 = vpop.f32.mrb[12].mxu1 }
 0x179   : > { %v605_v48 = vadd.f32 %v597_v47, %v500_v37  ;;  %v1281_v49 = vpop.f32.mrb[13].mxu1 }
 0x17a   : > { %v600_v50 = vpop.f32.mrb[14].mxu1 }
 0x17b   : > { %v556_v51 = vpop.f32.mrb[12].mxu0  ;;  %v1282_v52 = vpop.f32.mrb[15].mxu1 }
 0x17c   : > { %v603_v53 = vadd.f32 %v556_v51, %v498_v42  ;;  %v558_v54 = vpop.f32.mrb[13].mxu0 }
 0x17d   : > { %v604_v55 = vadd.f32 %v558_v54, %v499_v44  ;;  %v560_v56 = vpop.f32.mrb[14].mxu0 }
 0x17e   : > { %v561_v57 = vpop.f32.mrb[15].mxu0 }
 0x180   : > { %v702_v58 = vpop.f32.mrb[16].mxu1 }
 0x181   : > { %v710_v59 = vadd.f32 %v702_v58, %v605_v48  ;;  %v1287_v60 = vpop.f32.mrb[17].mxu1 }
 0x182   : > { %v705_v61 = vpop.f32.mrb[18].mxu1 }
 0x183   : > { %v661_v62 = vpop.f32.mrb[16].mxu0  ;;  %v1288_v63 = vpop.f32.mrb[19].mxu1 }
 0x184   : > { %v708_v0 = vadd.f32 %v661_v62, %v603_v53  ;;  %v663_v1 = vpop.f32.mrb[17].mxu0 }
 0x185   : > { %v709_v2 = vadd.f32 %v663_v1, %v604_v55  ;;  %v665_v4 = vpop.f32.mrb[18].mxu0 }
 0x186   : > { %v666_v5 = vpop.f32.mrb[19].mxu0 }
 0x188   : > { %v807_v7 = vpop.f32.mrb[20].mxu1 }
 0x189   : > { %v815_v8 = vadd.f32 %v807_v7, %v710_v59  ;;  %v1293_v9 = vpop.f32.mrb[21].mxu1 }
 0x18a   : > { %v810_v10 = vpop.f32.mrb[22].mxu1 }
 0x18b   : > { %v766_v11 = vpop.f32.mrb[20].mxu0  ;;  %v1294_v12 = vpop.f32.mrb[23].mxu1 }
 0x18c   : > { %v813_v13 = vadd.f32 %v766_v11, %v708_v0  ;;  %v768_v14 = vpop.f32.mrb[21].mxu0 }
 0x18d   : > { %v814_v15 = vadd.f32 %v768_v14, %v709_v2  ;;  %v770_v16 = vpop.f32.mrb[22].mxu0 }
 0x18e   : > { %v771_v17 = vpop.f32.mrb[23].mxu0 }
 0x190   : > { %v912_v18 = vpop.f32.mrb[24].mxu1 }
 0x191   : > { %v920_v19 = vadd.f32 %v912_v18, %v815_v8  ;;  %v1299_v20 = vpop.f32.mrb[25].mxu1 }
 0x192   : > { %v915_v21 = vpop.f32.mrb[26].mxu1 }
 0x193   : > { %v871_v22 = vpop.f32.mrb[24].mxu0  ;;  %v1300_v23 = vpop.f32.mrb[27].mxu1 }
 0x194   : > { %v918_v24 = vadd.f32 %v871_v22, %v813_v13  ;;  %v873_v3 = vpop.f32.mrb[25].mxu0 }
 0x195   : > { %v919_v25 = vadd.f32 %v873_v3, %v814_v15  ;;  %v875_v26 = vpop.f32.mrb[26].mxu0 }
 0x196   : > { %v876_v27 = vpop.f32.mrb[27].mxu0 }
 0x198   : > { %v1017_v28 = vpop.f32.mrb[28].mxu1 }
 0x199   : > { %v1025_v6 = vadd.f32 %v1017_v28, %v920_v19  ;;  %v1305_v29 = vpop.f32.mrb[29].mxu1 }
 0x19a   : > { %v1020_v30 = vpop.f32.mrb[30].mxu1 }
 0x19b   : > { %v976_v31 = vpop.f32.mrb[28].mxu0  ;;  %v1306_v32 = vpop.f32.mrb[31].mxu1 }
 0x19c   : > { %v1023_v33 = vadd.f32 %v976_v31, %v918_v24  ;;  %v978_v34 = vpop.f32.mrb[29].mxu0 }
 0x19d   : > { %v1024_v35 = vadd.f32 %v978_v34, %v919_v25  ;;  %v980_v36 = vpop.f32.mrb[30].mxu0 }
 0x19e   : > { %v981_v37 = vpop.f32.mrb[31].mxu0 }
 0x1a0   : > { %v1122_v38 = vpop.f32.mrb[32].mxu1 }
 0x1a1   : > { %v1130_v40 = vadd.f32 %v1122_v38, %v1025_v6  ;;  %v1311_v41 = vpop.f32.mrb[33].mxu1 }
 0x1a2   : > { %v1125_v42 = vpop.f32.mrb[34].mxu1 }
 0x1a3   : > { %v1139_v43 = vadd.f32 %v1135_v39, %v1130_v40  ;;  %v1081_v44 = vpop.f32.mrb[32].mxu0  ;;  %v1312_v45 = vpop.f32.mrb[35].mxu1 }
 0x1a4   : > { %v1128_v46 = vadd.f32 %v1081_v44, %v1023_v33  ;;  %v1083_v47 = vpop.f32.mrb[33].mxu0 }
 0x1a5   : > { %v1142_v48 = vmax.f32 %v1139_v43, 0.0  ;;  %v1129_v49 = vadd.f32 %v1083_v47, %v1024_v35  ;;  %v1085_v50 = vpop.f32.mrb[34].mxu0 }
 0x1a6   : > { %v1137_v51 = vadd.f32 %v1135_v39, %v1128_v46  ;;  %v1086_v52 = vpop.f32.mrb[35].mxu0 }
 0x1a7   : > { %1149 = vst.msk [vmem:[%s170_s24 + $0x8] sm:$0xf] %vm1148_vm11, %v1142_v48  ;;  %v1138_v53 = vadd.f32 %v1135_v39, %v1129_v49 }
 0x1a8   : > { %v1140_v54 = vmax.f32 %v1137_v51, 0.0 }
 0x1a9   : > { %v1141_v55 = vmax.f32 %v1138_v53, 0.0 }
 0x1ab   : > { %v1145_v56 = vcombine.low %v1140_v54, %v1141_v55 }
 0x1ad   : > { %1147 = vst [vmem:[%s170_s24] sm:$0xff] %v1145_v56 }
 0x1ae PF: > { %s13_s12 = sadd.s32 1, %s1343_s12  }
 0x1af   : > { %p10_p4 = scmp.ge.s32.totalorder %s13_s12, 4  }
 0x1b1   :  { %12 = sbr.rel (!%p10_p4) target bundleno = 1 (0x1), region = 62 }

</bundles_post_ra>
